<compile_context>
chip_gen: v7x
topology: tpu7x:2x2x1
jax: 0.10.0
libtpu: 0.0.40
codegen_flags: <defaults>
</compile_context>

<pallas_src>
import jax
import jax.numpy as jnp
from jax.experimental import pallas as pl
from jax.experimental.pallas import tpu as pltpu

D_IN = 28 * 28        # 784
D_H = 512
D_OUT = 10
D_OUT_PAD = 128       # lane-dense padded class dimension
NEG_BIG = -1e30       # padded-class bias -> exp() underflows to exactly 0


def mlp_kernel(x_ref, w1_ref, b1_ref, w2_ref, b2_ref, w3_ref, b3_ref, o_ref):
    # x_ref : (TB, 784)  bf16
    # w1_ref: (784, 512) bf16   b1_ref: (1, 512) f32
    # w2_ref: (512, 512) bf16   b2_ref: (1, 512) f32
    # w3_ref: (512, 128) bf16   b3_ref: (1, 128) f32 (cols 10..127 = -1e30)
    # o_ref : (TB, 128)  f32 lane-dense padded softmax output
    x = x_ref[...]

    # bf16 x bf16 -> f32 accumulation on the MXU; elementwise stays f32.
    h1 = jnp.dot(x, w1_ref[...], preferred_element_type=jnp.float32) + b1_ref[...]
    h1 = jnp.maximum(h1, 0.0).astype(jnp.bfloat16)

    h2 = jnp.dot(h1, w2_ref[...], preferred_element_type=jnp.float32) + b2_ref[...]
    h2 = jnp.maximum(h2, 0.0).astype(jnp.bfloat16)

    logits = jnp.dot(h2, w3_ref[...], preferred_element_type=jnp.float32) + b3_ref[...]

    # Row softmax over the padded 128-lane class dim.  Padded logits are
    # ~-1e30 so exp(padded - max) == 0 and the result matches the 10-class
    # softmax exactly.
    m = jnp.max(logits, axis=-1, keepdims=True)
    e = jnp.exp(logits - m)
    s = jnp.sum(e, axis=-1, keepdims=True)
    inv = pl.reciprocal(s)                      # exact; keeps row sums == 1
    o_ref[...] = (e * inv).astype(o_ref.dtype)


def prepare_params(w1, b1, w2, b2, w3, b3):
    """One-time parameter prep (hoisted out of the per-call forward).
    PyTorch nn.Linear stores W as (out, in); we transpose, pad the 10-class
    head to 128 lanes, and cast matmul operands to bf16 (biases stay f32)."""
    w1t = jnp.asarray(w1, jnp.float32).T.astype(jnp.bfloat16)          # (784,512)
    w2t = jnp.asarray(w2, jnp.float32).T.astype(jnp.bfloat16)          # (512,512)
    w3t = (jnp.zeros((D_H, D_OUT_PAD), jnp.float32)
           .at[:, :D_OUT].set(jnp.asarray(w3, jnp.float32).T)
           .astype(jnp.bfloat16))                                      # (512,128)
    b1r = jnp.asarray(b1, jnp.float32).reshape(1, D_H)
    b2r = jnp.asarray(b2, jnp.float32).reshape(1, D_H)
    b3p = (jnp.full((1, D_OUT_PAD), NEG_BIG, jnp.float32)
           .at[0, :D_OUT].set(jnp.asarray(b3, jnp.float32)))
    return (w1t, b1r, w2t, b2r, w3t, b3p)


def _pick_batch_tile(n):
    """Batch tile: multiple of 16 sublanes (bf16 packing), capped at 512.
    For batches big enough to split, aim for >=2 grid steps so v7x's two
    TensorCores both get work under dimension_semantics=("parallel",)."""
    if n <= 256:
        return ((n + 15) // 16) * 16
    tb = ((-(-n // 2) + 127) // 128) * 128   # ~ceil(n/2), 128-aligned
    return min(512, tb)


def mlp_forward(x, params):
    """x: (N, 1, 28, 28) or (N, 784); params from prepare_params().
    Returns (N, 10) softmax probabilities matching the PyTorch module."""
    w1t, b1r, w2t, b2r, w3t, b3p = params
    N = x.shape[0]
    xf = x.reshape(N, -1).astype(jnp.float32)          # nn.Flatten
    assert xf.shape[1] == D_IN

    TB = _pick_batch_tile(N)
    Npad = ((N + TB - 1) // TB) * TB
    if Npad != N:
        xf = jnp.pad(xf, ((0, Npad - N), (0, 0)))
    xb = xf.astype(jnp.bfloat16)

    def _resident(shape):
        # Constant index_map -> DMA'd once, resident in VMEM across the grid;
        # single-buffered since the block never changes.
        return pl.BlockSpec(shape, lambda n: (0, 0), pipeline_mode=pl.Buffered(1))

    out_pad = pl.pallas_call(
        mlp_kernel,
        out_shape=jax.ShapeDtypeStruct((Npad, D_OUT_PAD), jnp.float32),
        grid=(Npad // TB,),
        in_specs=[
            pl.BlockSpec((TB, D_IN), lambda n: (n, 0)),   # x tile (pipelined)
            _resident((D_IN, D_H)),                       # W1
            _resident((1, D_H)),                          # b1
            _resident((D_H, D_H)),                        # W2
            _resident((1, D_H)),                          # b2
            _resident((D_H, D_OUT_PAD)),                  # W3 (padded)
            _resident((1, D_OUT_PAD)),                    # b3 (padded)
        ],
        out_specs=pl.BlockSpec((TB, D_OUT_PAD), lambda n: (n, 0)),
        compiler_params=pltpu.CompilerParams(
            dimension_semantics=("parallel",),
            vmem_limit_bytes=32 * 1024 * 1024),
    )(xb, w1t, b1r, w2t, b2r, w3t, b3p)

    return out_pad[:N, :D_OUT]


def reference_f32(x, w1, b1, w2, b2, w3, b3):
    """Pure-JAX f32 reference mirroring the PyTorch forward."""
    xf = x.reshape(x.shape[0], -1)
    h1 = jnp.maximum(xf @ w1.T + b1, 0.0)
    h2 = jnp.maximum(h1 @ w2.T + b2, 0.0)
    return jax.nn.softmax(h2 @ w3.T + b3, axis=1)


def reference_bf16(x, w1, b1, w2, b2, w3, b3):
    """Reference mirroring the kernel's mixed precision (bf16 operands,
    f32 accumulation) for a tight numerical comparison."""
    def dot(a, b):
        return jnp.dot(a.astype(jnp.bfloat16), b.astype(jnp.bfloat16),
                       preferred_element_type=jnp.float32)
    xf = x.reshape(x.shape[0], -1)
    h1 = jnp.maximum(dot(xf, w1.T) + b1, 0.0)
    h2 = jnp.maximum(dot(h1, w2.T) + b2, 0.0)
    return jax.nn.softmax(dot(h2, w3.T) + b3, axis=1)


if __name__ == "__main__":
    key = jax.random.PRNGKey(0)
    kx, k1, k2, k3, kb1, kb2, kb3, kx2 = jax.random.split(key, 8)

    # Deterministic synthetic parameters (PyTorch nn.Linear layout: (out, in)).
    w1 = jax.random.normal(k1, (D_H, D_IN), dtype=jnp.float32) * 0.05
    b1 = jax.random.normal(kb1, (D_H,), dtype=jnp.float32) * 0.05
    w2 = jax.random.normal(k2, (D_H, D_H), dtype=jnp.float32) * 0.05
    b2 = jax.random.normal(kb2, (D_H,), dtype=jnp.float32) * 0.05
    w3 = jax.random.normal(k3, (D_OUT, D_H), dtype=jnp.float32) * 0.05
    b3 = jax.random.normal(kb3, (D_OUT,), dtype=jnp.float32) * 0.05

    # Parameter prep happens once, outside the forward (review item).
    params = jax.block_until_ready(prepare_params(w1, b1, w2, b2, w3, b3))
    fwd = jax.jit(mlp_forward)

    # Primary check: small batch in the module's expected input layout.
    N = 2
    x = jax.random.normal(kx, (N, 1, 28, 28), dtype=jnp.float32)
    out = jax.block_until_ready(fwd(x, params))
    assert out.shape == (N, D_OUT), out.shape

    ref16 = reference_bf16(x, w1, b1, w2, b2, w3, b3)
    ref32 = reference_f32(x, w1, b1, w2, b2, w3, b3)
    err16 = float(jnp.abs(out - ref16).max())
    err32 = float(jnp.abs(out - ref32).max())
    assert jnp.allclose(out, ref16, atol=1e-3), err16      # matches mixed-precision ref
    assert jnp.allclose(out, ref32, atol=5e-2), err32      # close to full-f32 PyTorch math
    assert jnp.allclose(jnp.sum(out, axis=1), 1.0, atol=1e-5)

    # Secondary check: batch large enough for >=2 grid steps (v7x 2-TC path)
    # plus batch padding (300 -> 2 tiles of 256).
    N2 = 300
    x2 = jax.random.normal(kx2, (N2, 1, 28, 28), dtype=jnp.float32)
    out2 = jax.block_until_ready(fwd(x2, params))
    assert out2.shape == (N2, D_OUT), out2.shape
    ref2 = reference_bf16(x2, w1, b1, w2, b2, w3, b3)
    assert jnp.allclose(out2, ref2, atol=1e-3), float(jnp.abs(out2 - ref2).max())
    assert jnp.allclose(jnp.sum(out2, axis=1), 1.0, atol=1e-5)

    print("KERNEL_OK")
</pallas_src>

<mosaic_0001>
module attributes {stable_mosaic.version = 11 : i64} {
  func.func @mlp_kernel(%arg0: i32, %arg1: memref<16x784xbf16, #tpu.memory_space<vmem>>, %arg2: memref<784x512xbf16, #tpu.memory_space<vmem>>, %arg3: memref<1x512xf32, #tpu.memory_space<vmem>>, %arg4: memref<512x512xbf16, #tpu.memory_space<vmem>>, %arg5: memref<1x512xf32, #tpu.memory_space<vmem>>, %arg6: memref<512x128xbf16, #tpu.memory_space<vmem>>, %arg7: memref<1x128xf32, #tpu.memory_space<vmem>>, %arg8: memref<16x128xf32, #tpu.memory_space<vmem>>) attributes {dimension_semantics = [#tpu.dimension_semantics<parallel>], iteration_bounds = array<i64: 1>, scalar_prefetch = 0 : i64, scratch_operands = 0 : i64, tpu.core_type = #tpu.core_type<tc>, window_params = [{transform_indices = @transform_0, window_bounds = array<i64: 16, 784>}, {pipeline_mode = #tpu.pipeline_mode<synchronous>, transform_indices = @transform_1, window_bounds = array<i64: 784, 512>}, {pipeline_mode = #tpu.pipeline_mode<synchronous>, transform_indices = @transform_2, window_bounds = array<i64: 1, 512>}, {pipeline_mode = #tpu.pipeline_mode<synchronous>, transform_indices = @transform_3, window_bounds = array<i64: 512, 512>}, {pipeline_mode = #tpu.pipeline_mode<synchronous>, transform_indices = @transform_4, window_bounds = array<i64: 1, 512>}, {pipeline_mode = #tpu.pipeline_mode<synchronous>, transform_indices = @transform_5, window_bounds = array<i64: 512, 128>}, {pipeline_mode = #tpu.pipeline_mode<synchronous>, transform_indices = @transform_6, window_bounds = array<i64: 1, 128>}, {transform_indices = @transform_7, window_bounds = array<i64: 16, 128>}]} {
    %c0 = arith.constant 0 : index
    %c0_0 = arith.constant 0 : index
    %0 = vector.load %arg1[%c0, %c0_0] : memref<16x784xbf16, #tpu.memory_space<vmem>>, vector<16x784xbf16>
    %c0_1 = arith.constant 0 : index
    %c0_2 = arith.constant 0 : index
    %1 = vector.load %arg2[%c0_1, %c0_2] : memref<784x512xbf16, #tpu.memory_space<vmem>>, vector<784x512xbf16>
    %cst = arith.constant dense<0.000000e+00> : vector<16x512xf32>
    %2 = tpu.matmul %0, %1, %cst {dimension_numbers = #tpu.dot_dimension_numbers<[1], [0], [0], [1], [0, 0, 1, 1], [], []>} : vector<16x784xbf16>, vector<784x512xbf16>, vector<16x512xf32> -> vector<16x512xf32>
    %c0_3 = arith.constant 0 : index
    %c0_4 = arith.constant 0 : index
    %3 = vector.load %arg3[%c0_3, %c0_4] : memref<1x512xf32, #tpu.memory_space<vmem>>, vector<1x512xf32>
    %4 = vector.broadcast %3 : vector<1x512xf32> to vector<16x512xf32>
    %5 = arith.addf %2, %4 : vector<16x512xf32>
    %cst_5 = arith.constant 0.000000e+00 : f32
    %6 = vector.broadcast %cst_5 : f32 to vector<16x512xf32>
    %7 = arith.maximumf %5, %6 : vector<16x512xf32>
    %8 = arith.truncf %7 : vector<16x512xf32> to vector<16x512xbf16>
    %c0_6 = arith.constant 0 : index
    %c0_7 = arith.constant 0 : index
    %9 = vector.load %arg4[%c0_6, %c0_7] : memref<512x512xbf16, #tpu.memory_space<vmem>>, vector<512x512xbf16>
    %cst_8 = arith.constant dense<0.000000e+00> : vector<16x512xf32>
    %10 = tpu.matmul %8, %9, %cst_8 {dimension_numbers = #tpu.dot_dimension_numbers<[1], [0], [0], [1], [0, 0, 1, 1], [], []>} : vector<16x512xbf16>, vector<512x512xbf16>, vector<16x512xf32> -> vector<16x512xf32>
    %c0_9 = arith.constant 0 : index
    %c0_10 = arith.constant 0 : index
    %11 = vector.load %arg5[%c0_9, %c0_10] : memref<1x512xf32, #tpu.memory_space<vmem>>, vector<1x512xf32>
    %12 = vector.broadcast %11 : vector<1x512xf32> to vector<16x512xf32>
    %13 = arith.addf %10, %12 : vector<16x512xf32>
    %cst_11 = arith.constant 0.000000e+00 : f32
    %14 = vector.broadcast %cst_11 : f32 to vector<16x512xf32>
    %15 = arith.maximumf %13, %14 : vector<16x512xf32>
    %16 = arith.truncf %15 : vector<16x512xf32> to vector<16x512xbf16>
    %c0_12 = arith.constant 0 : index
    %c0_13 = arith.constant 0 : index
    %17 = vector.load %arg6[%c0_12, %c0_13] : memref<512x128xbf16, #tpu.memory_space<vmem>>, vector<512x128xbf16>
    %cst_14 = arith.constant dense<0.000000e+00> : vector<16x128xf32>
    %18 = tpu.matmul %16, %17, %cst_14 {dimension_numbers = #tpu.dot_dimension_numbers<[1], [0], [0], [1], [0, 0, 1, 1], [], []>} : vector<16x512xbf16>, vector<512x128xbf16>, vector<16x128xf32> -> vector<16x128xf32>
    %c0_15 = arith.constant 0 : index
    %c0_16 = arith.constant 0 : index
    %19 = vector.load %arg7[%c0_15, %c0_16] : memref<1x128xf32, #tpu.memory_space<vmem>>, vector<1x128xf32>
    %20 = vector.broadcast %19 : vector<1x128xf32> to vector<16x128xf32>
    %21 = arith.addf %18, %20 : vector<16x128xf32>
    %cst_17 = arith.constant dense<0xFF800000> : vector<16xf32>
    %22 = vector.multi_reduction <maximumf>, %21, %cst_17 [1] : vector<16x128xf32> to vector<16xf32>
    %23 = vector.shape_cast %22 : vector<16xf32> to vector<16x1xf32>
    %24 = vector.broadcast %23 : vector<16x1xf32> to vector<16x128xf32>
    %25 = arith.subf %21, %24 : vector<16x128xf32>
    %26 = math.exp %25 : vector<16x128xf32>
    %cst_18 = arith.constant dense<0.000000e+00> : vector<16xf32>
    %27 = vector.multi_reduction <add>, %26, %cst_18 [1] : vector<16x128xf32> to vector<16xf32>
    %28 = vector.shape_cast %27 : vector<16xf32> to vector<16x1xf32>
    %29 = tpu.reciprocal %28 : vector<16x1xf32> -> vector<16x1xf32>
    %30 = vector.broadcast %29 : vector<16x1xf32> to vector<16x128xf32>
    %31 = arith.mulf %26, %30 : vector<16x128xf32>
    %c0_19 = arith.constant 0 : index
    %c0_20 = arith.constant 0 : index
    %32 = vector.load %arg8[%c0_19, %c0_20] : memref<16x128xf32, #tpu.memory_space<vmem>>, vector<16x128xf32>
    tpu.vector_store %arg8[%c0_19, %c0_20], %31 {strides = array<i32>} : memref<16x128xf32, #tpu.memory_space<vmem>>, vector<16x128xf32>,
    return
  }
  func.func @transform_0(%arg0: i32) -> (i32, i32) {
    %c0_i32 = arith.constant 0 : i32
    %c0_i32_0 = arith.constant 0 : i32
    return %arg0, %c0_i32 : i32, i32
  }
  func.func @transform_1(%arg0: i32) -> (i32, i32) {
    %c0_i32 = arith.constant 0 : i32
    %c0_i32_0 = arith.constant 0 : i32
    %c0_i32_1 = arith.constant 0 : i32
    return %c0_i32, %c0_i32_0 : i32, i32
  }
  func.func @transform_2(%arg0: i32) -> (i32, i32) {
    %c0_i32 = arith.constant 0 : i32
    %c0_i32_0 = arith.constant 0 : i32
    %c0_i32_1 = arith.constant 0 : i32
    return %c0_i32, %c0_i32_0 : i32, i32
  }
  func.func @transform_3(%arg0: i32) -> (i32, i32) {
    %c0_i32 = arith.constant 0 : i32
    %c0_i32_0 = arith.constant 0 : i32
    %c0_i32_1 = arith.constant 0 : i32
    return %c0_i32, %c0_i32_0 : i32, i32
  }
  func.func @transform_4(%arg0: i32) -> (i32, i32) {
    %c0_i32 = arith.constant 0 : i32
    %c0_i32_0 = arith.constant 0 : i32
    %c0_i32_1 = arith.constant 0 : i32
    return %c0_i32, %c0_i32_0 : i32, i32
  }
  func.func @transform_5(%arg0: i32) -> (i32, i32) {
    %c0_i32 = arith.constant 0 : i32
    %c0_i32_0 = arith.constant 0 : i32
    %c0_i32_1 = arith.constant 0 : i32
    return %c0_i32, %c0_i32_0 : i32, i32
  }
  func.func @transform_6(%arg0: i32) -> (i32, i32) {
    %c0_i32 = arith.constant 0 : i32
    %c0_i32_0 = arith.constant 0 : i32
    %c0_i32_1 = arith.constant 0 : i32
    return %c0_i32, %c0_i32_0 : i32, i32
  }
  func.func @transform_7(%arg0: i32) -> (i32, i32) {
    %c0_i32 = arith.constant 0 : i32
    %c0_i32_0 = arith.constant 0 : i32
    return %arg0, %c0_i32 : i32, i32
  }
}

</mosaic_0001>

<bundles_post_ra>
// kernel: mlp_forward.1
= control target key start
LH: loop header
LB: loop body
LE: loop exit
PB: predicated region body
PF: predicated region fallthrough
CT: control target
= control target key end

     0   :  { %12 = vsyncpa [#allocation3], 0  ;;  %s4239_s0 = inlined_call_operand.vmem [shape: bf16[16,784], index: 0, kind: input, shape index: {}]   ;;  %s4240_s1 = inlined_call_operand.hbm [shape: bf16[784,512], index: 1, kind: input, shape index: {}]   ;;  %s4241_s2 = inlined_call_operand.vmem [shape: f32[1,512], index: 2, kind: input, shape index: {}]   ;;  %s4242_s3 = inlined_call_operand.hbm [shape: bf16[512,512], index: 3, kind: input, shape index: {}]   ;;  %s4243_s4 = inlined_call_operand.vmem [shape: f32[1,512], index: 4, kind: input, shape index: {}]   ;;  %s4244_s5 = inlined_call_operand.hbm [shape: bf16[512,128], index: 5, kind: input, shape index: {}]   ;;  %s4245_s6 = inlined_call_operand.vmem [shape: f32[1,128], index: 6, kind: input, shape index: {}]   ;;  %s4246_s7 = inlined_call_operand.vmem [shape: f32[16,128], index: 7, kind: output, shape index: {}]  }
   0x1   :  { %13 = vsyncpa [#allocation5], 0  ;;  %s4086_s24 = smov [#allocation4]   ;;  %s4087_s26 = smov [#allocation2]  }
   0x2   :  { %s35_s25 = sshll.u32 %s4086_s24, 4  ;;  %s21_s27 = sshll.u32 %s4087_s26, 4  ;;  %s36_s25 = int_to_ptr.vmem [resolvable:$true] %s35_s25  ;;  %s4134_s27 = int_to_ptr.vmem [resolvable:$true] %s21_s27 }
   0x3   :  { %s4016_s30 = scalar_lea.hbm %s4242_s3, 16384 }
   0x4   :  { %p4017_p0 = scmp.ne.s32.totalorder %s4242_s3, %s4016_s30  ;;  %p4020_p1 = scmp.lt.u32.totalorder %s4016_s30, %s4242_s3 }
   0x6   :  { %p4022_p2 = pnand %p4020_p1, %p4017_p0 }
   0x8   :  { %4025 = shalt.err (!%p4022_p2)
}
   0x9   :  { %s4026_s12 = scalar_lea.vmem %s36_s25, 16384  ;;  %p4031_p4 = scmp.lt.s32.totalorder %s36_s25, %s36_s25 }
   0xa   :  { %p4027_p3 = scmp.ne.s32.totalorder %s36_s25, %s4026_s12  ;;  %p4032_p5 = scmp.lt.s32.totalorder %s4026_s12, %s4026_s12 }
   0xc   :  { %p4033_p6 = por %p4032_p5, %p4031_p4 }
   0xe   :  { %p4034_p7 = pnand %p4033_p6, %p4027_p3 }
  0x10   :  { %4037 = shalt.err (!%p4034_p7)
}
  0x11   :  { %s4088_s13 = smov 256   ;;  %s4089_s14 = smov 16  }
  0x12   :  { %41 = dma.hbm_to_vmem [thread:$0]  %s4242_s3, 16384, %s36_s25, [#allocation5], %s4088_s13, %s4088_s13, %s4089_s14  }
  0x13   :  { %s4038_s19 = scalar_lea.hbm %s4240_s1, 25088 }
  0x14   :  { %p4039_p8 = scmp.ne.s32.totalorder %s4240_s1, %s4038_s19  ;;  %p4042_p9 = scmp.lt.u32.totalorder %s4038_s19, %s4240_s1 }
  0x16   :  { %p4044_p10 = pnand %p4042_p9, %p4039_p8 }
  0x18   :  { %4047 = shalt.err (!%p4044_p10)
}
  0x19   :  { %s4048_s24 = scalar_lea.vmem %s4134_s27, 25088  ;;  %p4053_p12 = scmp.lt.s32.totalorder %s4134_s27, %s4134_s27 }
  0x1a   :  { %p4049_p11 = scmp.ne.s32.totalorder %s4134_s27, %s4048_s24  ;;  %p4054_p13 = scmp.lt.s32.totalorder %s4048_s24, %s4048_s24 }
  0x1c   :  { %p4055_p0 = por %p4054_p13, %p4053_p12 }
  0x1e   :  { %p4056_p1 = pnand %p4055_p0, %p4049_p11 }
  0x20   :  { %4059 = shalt.err (!%p4056_p1)
}
  0x21   :  { %27 = dma.hbm_to_vmem [thread:$0]  %s4240_s1, 25088, %s4134_s27, [#allocation3], %s4088_s13, %s4088_s13, %s4089_s14  }
  0x22   :  { %s4090_s26 = smov [#allocation6]   ;;  %s4060_s8 = scalar_lea.hbm %s4244_s5, 4096 }
  0x23   :  { %s49_s28 = sshll.u32 %s4090_s26, 4  ;;  %p4061_p2 = scmp.ne.s32.totalorder %s4244_s5, %s4060_s8  ;;  %s50_s28 = int_to_ptr.vmem [resolvable:$true] %s49_s28 }
  0x24   :  { %p4064_p3 = scmp.lt.u32.totalorder %s4060_s8, %s4244_s5 }
  0x26   :  { %p4066_p4 = pnand %p4064_p3, %p4061_p2 }
  0x28   :  { %4069 = shalt.err (!%p4066_p4)
}
  0x29   :  { %s4070_s15 = scalar_lea.vmem %s50_s28, 4096  ;;  %p4075_p6 = scmp.lt.s32.totalorder %s50_s28, %s50_s28 }
  0x2a   :  { %p4071_p5 = scmp.ne.s32.totalorder %s50_s28, %s4070_s15  ;;  %p4076_p7 = scmp.lt.s32.totalorder %s4070_s15, %s4070_s15 }
  0x2c   :  { %p4077_p8 = por %p4076_p7, %p4075_p6 }
  0x2e   :  { %p4078_p9 = pnand %p4077_p8, %p4071_p5 }
  0x30   :  { %4081 = shalt.err (!%p4078_p9)
}
  0x31   :  { %s4091_s1 = smov 64   ;;  %s4092_s27 = smov 4  }
  0x32   :  { %55 = dma.hbm_to_vmem [thread:$0]  %s4244_s5, 4096, %s50_s28, [#allocation5], %s4091_s1, %s4091_s1, %s4092_s27  }
  0x33   :  { %4082 = dma.done.wait [#allocation3], 25088  }
  0x34   :  { %4083 = vsyncadd [#allocation3], 4294942208 }
  0x35   :  { %4084 = dma.done.wait [#allocation5], 20480  }
  0x36   :  { %4085 = vsyncadd [#allocation5], 4294946816  ;;  %v3480_v0 = vld [vmem:[#allocation2 + $0x4] ss:$16 sps:$4 sm:$0xff]   ;;  %v3482_v1 = vld [vmem:[#allocation2 + $0xc] ss:$16 sps:$4 sm:$0xff]  }
  0x37   :  { %1313 = vmatprep.subr.bf16.mxu0 %v3480_v0  ;;  %v3484_v2 = vld [vmem:[#allocation2] ss:$16 sps:$4 sm:$0xff]   ;;  %v3485_v3 = vld [vmem:[#allocation2 + $0x8] ss:$16 sps:$4 sm:$0xff]   ;;  %1485 = vmatprep.subr.bf16.mxu1 %v3482_v1  ;;  %v3486_v4 = vld [vmem:[#allocation2 + $0x24] ss:$16 sps:$4 sm:$0xff]  }
  0x38   :  { %1314 = vmatpush1.bf16.msra.mxu0 %v3484_v2  ;;  %1486 = vmatpush1.bf16.msra.mxu1 %v3485_v3  ;;  %v3488_v5 = vld [vmem:[#allocation2 + $0x2c] ss:$16 sps:$4 sm:$0xff]   ;;  %v3490_v6 = vld [vmem:[#allocation2 + $0x20] ss:$16 sps:$4 sm:$0xff]   ;;  %v3491_v7 = vld [vmem:[#allocation2 + $0x28] ss:$16 sps:$4 sm:$0xff]  }
  0x39   :  { %1315 = vmatprep.subr.bf16.mxu0 %v3486_v4  ;;  %1487 = vmatprep.subr.bf16.mxu1 %v3488_v5  ;;  %v3492_v8 = vld [vmem:[#allocation2 + $0x44] ss:$16 sps:$4 sm:$0xff]   ;;  %v3494_v9 = vld [vmem:[#allocation2 + $0x4c] ss:$16 sps:$4 sm:$0xff]   ;;  %v3496_v10 = vld [vmem:[#allocation2 + $0x40] ss:$16 sps:$4 sm:$0xff]  }
  0x3a   :  { %v3497_v11 = vld [vmem:[#allocation2 + $0x48] ss:$16 sps:$4 sm:$0xff]   ;;  %v3498_v12 = vld [vmem:[#allocation2 + $0x64] ss:$16 sps:$4 sm:$0xff]   ;;  %v3500_v13 = vld [vmem:[#allocation2 + $0x6c] ss:$16 sps:$4 sm:$0xff]  }
  0x3b   :  { %v3502_v14 = vld [vmem:[#allocation2 + $0x60] ss:$16 sps:$4 sm:$0xff]   ;;  %v3503_v15 = vld [vmem:[#allocation2 + $0x68] ss:$16 sps:$4 sm:$0xff]   ;;  %v3504_v16 = vld [vmem:[#allocation2 + $0x84] ss:$16 sps:$4 sm:$0xff]  }
  0x3c   :  { %1316 = vmatpush1.bf16.msra.mxu0 %v3490_v6  ;;  %1488 = vmatpush1.bf16.msra.mxu1 %v3491_v7  ;;  %v3506_v17 = vld [vmem:[#allocation2 + $0x8c] ss:$16 sps:$4 sm:$0xff]   ;;  %v3508_v18 = vld [vmem:[#allocation2 + $0x80] ss:$16 sps:$4 sm:$0xff]   ;;  %v3509_v19 = vld [vmem:[#allocation2 + $0x88] ss:$16 sps:$4 sm:$0xff]  }
  0x3d   :  { %1317 = vmatprep.subr.bf16.mxu0 %v3492_v8  ;;  %1489 = vmatprep.subr.bf16.mxu1 %v3494_v9  ;;  %v3510_v20 = vld [vmem:[#allocation2 + $0xa4] ss:$16 sps:$4 sm:$0xff]   ;;  %v3512_v21 = vld [vmem:[#allocation2 + $0xac] ss:$16 sps:$4 sm:$0xff]   ;;  %v3514_v22 = vld [vmem:[#allocation2 + $0xa0] ss:$16 sps:$4 sm:$0xff]  }
  0x3e   :  { %v3515_v23 = vld [vmem:[#allocation2 + $0xa8] ss:$16 sps:$4 sm:$0xff]   ;;  %v3516_v24 = vld [vmem:[#allocation2 + $0xc4] ss:$16 sps:$4 sm:$0xff]   ;;  %v3518_v25 = vld [vmem:[#allocation2 + $0xcc] ss:$16 sps:$4 sm:$0xff]  }
  0x3f   :  { %v3520_v26 = vld [vmem:[#allocation2 + $0xc0] ss:$16 sps:$4 sm:$0xff]   ;;  %v3521_v27 = vld [vmem:[#allocation2 + $0xc8] ss:$16 sps:$4 sm:$0xff]   ;;  %v3522_v28 = vld [vmem:[#allocation2 + $0xe4] ss:$16 sps:$4 sm:$0xff]  }
  0x40   :  { %1318 = vmatpush1.bf16.msra.mxu0 %v3496_v10  ;;  %1490 = vmatpush1.bf16.msra.mxu1 %v3497_v11  ;;  %v3524_v29 = vld [vmem:[#allocation2 + $0xec] ss:$16 sps:$4 sm:$0xff]   ;;  %v3526_v30 = vld [vmem:[#allocation2 + $0xe0] ss:$16 sps:$4 sm:$0xff]   ;;  %v3527_v31 = vld [vmem:[#allocation2 + $0xe8] ss:$16 sps:$4 sm:$0xff]  }
  0x41   :  { %1319 = vmatprep.subr.bf16.mxu0 %v3498_v12  ;;  %1491 = vmatprep.subr.bf16.mxu1 %v3500_v13  ;;  %v3528_v32 = vld [vmem:[#allocation2 + $0x104] ss:$16 sps:$4 sm:$0xff]   ;;  %v3530_v33 = vld [vmem:[#allocation2 + $0x10c] ss:$16 sps:$4 sm:$0xff]   ;;  %v3532_v34 = vld [vmem:[#allocation2 + $0x100] ss:$16 sps:$4 sm:$0xff]  }
  0x42   :  { %v3533_v35 = vld [vmem:[#allocation2 + $0x108] ss:$16 sps:$4 sm:$0xff]   ;;  %v3534_v36 = vld [vmem:[#allocation2 + $0x124] ss:$16 sps:$4 sm:$0xff]   ;;  %v3536_v37 = vld [vmem:[#allocation2 + $0x12c] ss:$16 sps:$4 sm:$0xff]  }
  0x43   :  { %v3538_v38 = vld [vmem:[#allocation2 + $0x120] ss:$16 sps:$4 sm:$0xff]   ;;  %v3539_v39 = vld [vmem:[#allocation2 + $0x128] ss:$16 sps:$4 sm:$0xff]   ;;  %v3540_v40 = vld [vmem:[#allocation2 + $0x144] ss:$16 sps:$4 sm:$0xff]  }
  0x44   :  { %1320 = vmatpush1.bf16.msra.mxu0 %v3502_v14  ;;  %1492 = vmatpush1.bf16.msra.mxu1 %v3503_v15  ;;  %v3542_v41 = vld [vmem:[#allocation2 + $0x14c] ss:$16 sps:$4 sm:$0xff]   ;;  %v3544_v42 = vld [vmem:[#allocation2 + $0x140] ss:$16 sps:$4 sm:$0xff]   ;;  %v3545_v43 = vld [vmem:[#allocation2 + $0x148] ss:$16 sps:$4 sm:$0xff]  }
  0x45   :  { %1321 = vmatprep.subr.bf16.mxu0 %v3504_v16  ;;  %1493 = vmatprep.subr.bf16.mxu1 %v3506_v17  ;;  %v3546_v44 = vld [vmem:[#allocation2 + $0x164] ss:$16 sps:$4 sm:$0xff]   ;;  %v3548_v45 = vld [vmem:[#allocation2 + $0x16c] ss:$16 sps:$4 sm:$0xff]   ;;  %v3550_v46 = vld [vmem:[#allocation2 + $0x160] ss:$16 sps:$4 sm:$0xff]  }
  0x46   :  { %v3551_v47 = vld [vmem:[#allocation2 + $0x168] ss:$16 sps:$4 sm:$0xff]   ;;  %v3578_v48 = vld [vmem:[%s4239_s0 + $0x4] ss:$28 sps:$4 sm:$0xff]   ;;  %v3554_v50 = vld [vmem:[#allocation2 + $0x18c] ss:$16 sps:$4 sm:$0xff]  }
  0x47   :  { %v3552_v49 = vld [vmem:[#allocation2 + $0x184] ss:$16 sps:$4 sm:$0xff]   ;;  %1345 = vmatprep.mubr.bf16.mxu0 %v3578_v48  ;;  %1517 = vmatprep.mubr.bf16.mxu1 %v3578_v48  ;;  %v3556_v51 = vld [vmem:[#allocation2 + $0x180] ss:$16 sps:$4 sm:$0xff]   ;;  %v3557_v52 = vld [vmem:[#allocation2 + $0x188] ss:$16 sps:$4 sm:$0xff]  }
  0x48   :  { %1322 = vmatpush1.bf16.msra.mxu0 %v3508_v18  ;;  %1494 = vmatpush1.bf16.msra.mxu1 %v3509_v19  ;;  %v3558_v53 = vld [vmem:[#allocation2 + $0x1a4] ss:$16 sps:$4 sm:$0xff]   ;;  %v3560_v54 = vld [vmem:[#allocation2 + $0x1ac] ss:$16 sps:$4 sm:$0xff]   ;;  %v3562_v55 = vld [vmem:[#allocation2 + $0x1a0] ss:$16 sps:$4 sm:$0xff]  }
  0x49   :  { %1323 = vmatprep.subr.bf16.mxu0 %v3510_v20  ;;  %1495 = vmatprep.subr.bf16.mxu1 %v3512_v21  ;;  %v3563_v56 = vld [vmem:[#allocation2 + $0x1a8] ss:$16 sps:$4 sm:$0xff]   ;;  %v3564_v57 = vld [vmem:[#allocation2 + $0x1c4] ss:$16 sps:$4 sm:$0xff]   ;;  %v3566_v58 = vld [vmem:[#allocation2 + $0x1cc] ss:$16 sps:$4 sm:$0xff]  }
  0x4a   :  { %v3568_v59 = vld [vmem:[#allocation2 + $0x1c0] ss:$16 sps:$4 sm:$0xff]   ;;  %v3569_v60 = vld [vmem:[#allocation2 + $0x1c8] ss:$16 sps:$4 sm:$0xff]   ;;  %v3570_v61 = vld [vmem:[#allocation2 + $0x1e4] ss:$16 sps:$4 sm:$0xff]  }
  0x4b   :  { %v3572_v62 = vld [vmem:[#allocation2 + $0x1ec] ss:$16 sps:$4 sm:$0xff]   ;;  %v3574_v63 = vld [vmem:[#allocation2 + $0x1e0] ss:$16 sps:$4 sm:$0xff]   ;;  %v3575_v0 = vld [vmem:[#allocation2 + $0x1e8] ss:$16 sps:$4 sm:$0xff]  }
  0x4c   :  { %1324 = vmatpush1.bf16.msra.mxu0 %v3514_v22  ;;  %1496 = vmatpush1.bf16.msra.mxu1 %v3515_v23  ;;  %v3581_v1 = vld [vmem:[#allocation2 + $0x204] ss:$16 sps:$4 sm:$0xff]   ;;  %v3584_v2 = vld [vmem:[#allocation2 + $0x20c] ss:$16 sps:$4 sm:$0xff]   ;;  %v3579_v4 = vld [vmem:[#allocation2 + $0x200] ss:$16 sps:$4 sm:$0xff]  }
  0x4d   :  { %1325 = vmatprep.subr.bf16.mxu0 %v3516_v24  ;;  %1497 = vmatprep.subr.bf16.mxu1 %v3518_v25  ;;  %v3576_v3 = vld [vmem:[%s4239_s0] ss:$28 sps:$4 sm:$0xff]   ;;  %v3582_v5 = vld [vmem:[#allocation2 + $0x208] ss:$16 sps:$4 sm:$0xff]   ;;  %v3587_v6 = vld [vmem:[#allocation2 + $0x224] ss:$16 sps:$4 sm:$0xff]  }
  0x4e   :  { %v3590_v7 = vld [vmem:[#allocation2 + $0x22c] ss:$16 sps:$4 sm:$0xff]   ;;  %v3585_v8 = vld [vmem:[#allocation2 + $0x220] ss:$16 sps:$4 sm:$0xff]   ;;  %v3588_v9 = vld [vmem:[#allocation2 + $0x228] ss:$16 sps:$4 sm:$0xff]  }
  0x4f   :  { %v3593_v10 = vld [vmem:[#allocation2 + $0x244] ss:$16 sps:$4 sm:$0xff]   ;;  %v3596_v11 = vld [vmem:[#allocation2 + $0x24c] ss:$16 sps:$4 sm:$0xff]   ;;  %v3591_v12 = vld [vmem:[#allocation2 + $0x240] ss:$16 sps:$4 sm:$0xff]  }
  0x50   :  { %1326 = vmatpush1.bf16.msra.mxu0 %v3520_v26  ;;  %1498 = vmatpush1.bf16.msra.mxu1 %v3521_v27  ;;  %v3594_v13 = vld [vmem:[#allocation2 + $0x248] ss:$16 sps:$4 sm:$0xff]   ;;  %v3599_v14 = vld [vmem:[#allocation2 + $0x264] ss:$16 sps:$4 sm:$0xff]   ;;  %v3602_v15 = vld [vmem:[#allocation2 + $0x26c] ss:$16 sps:$4 sm:$0xff]  }
  0x51   :  { %1327 = vmatprep.subr.bf16.mxu0 %v3522_v28  ;;  %1499 = vmatprep.subr.bf16.mxu1 %v3524_v29  ;;  %v3597_v16 = vld [vmem:[#allocation2 + $0x260] ss:$16 sps:$4 sm:$0xff]   ;;  %v3600_v17 = vld [vmem:[#allocation2 + $0x268] ss:$16 sps:$4 sm:$0xff]   ;;  %v3605_v18 = vld [vmem:[#allocation2 + $0x284] ss:$16 sps:$4 sm:$0xff]  }
  0x52   :  { %v3608_v19 = vld [vmem:[#allocation2 + $0x28c] ss:$16 sps:$4 sm:$0xff]   ;;  %v3603_v20 = vld [vmem:[#allocation2 + $0x280] ss:$16 sps:$4 sm:$0xff]   ;;  %v3606_v21 = vld [vmem:[#allocation2 + $0x288] ss:$16 sps:$4 sm:$0xff]  }
  0x53   :  { %v3611_v22 = vld [vmem:[#allocation2 + $0x2a4] ss:$16 sps:$4 sm:$0xff]   ;;  %v3614_v23 = vld [vmem:[#allocation2 + $0x2ac] ss:$16 sps:$4 sm:$0xff]   ;;  %v3609_v24 = vld [vmem:[#allocation2 + $0x2a0] ss:$16 sps:$4 sm:$0xff]  }
  0x54   :  { %1328 = vmatpush1.bf16.msra.mxu0 %v3526_v30  ;;  %1500 = vmatpush1.bf16.msra.mxu1 %v3527_v31  ;;  %v3612_v25 = vld [vmem:[#allocation2 + $0x2a8] ss:$16 sps:$4 sm:$0xff]   ;;  %v3617_v26 = vld [vmem:[#allocation2 + $0x2c4] ss:$16 sps:$4 sm:$0xff]   ;;  %v3620_v27 = vld [vmem:[#allocation2 + $0x2cc] ss:$16 sps:$4 sm:$0xff]  }
  0x55   :  { %1329 = vmatprep.subr.bf16.mxu0 %v3528_v32  ;;  %1501 = vmatprep.subr.bf16.mxu1 %v3530_v33  ;;  %v3615_v28 = vld [vmem:[#allocation2 + $0x2c0] ss:$16 sps:$4 sm:$0xff]   ;;  %v3618_v29 = vld [vmem:[#allocation2 + $0x2c8] ss:$16 sps:$4 sm:$0xff]   ;;  %v3623_v31 = vld [vmem:[#allocation2 + $0x2e4] ss:$16 sps:$4 sm:$0xff]  }
  0x56   :  { %v3677_v30 = vld [vmem:[%s4239_s0 + $0xc] ss:$28 sps:$4 sm:$0xff]   ;;  %v3621_v33 = vld [vmem:[#allocation2 + $0x2e0] ss:$16 sps:$4 sm:$0xff]   ;;  %vm1309_vm0 = vcmask 130048  }
  0x57   :  { %v3626_v32 = vld [vmem:[#allocation2 + $0x2ec] ss:$16 sps:$4 sm:$0xff]  }
  0x58   :  { %1330 = vmatpush1.bf16.msra.mxu0 %v3532_v34  ;;  %1502 = vmatpush1.bf16.msra.mxu1 %v3533_v35  ;;  %v3624_v34 = vld [vmem:[#allocation2 + $0x2e8] ss:$16 sps:$4 sm:$0xff]   ;;  %v3629_v35 = vld [vmem:[#allocation2 + $0x304] ss:$16 sps:$4 sm:$0xff]   ;;  %v3650_v48 = vld [vmem:[#allocation2 + $0x36c] ss:$16 sps:$4 sm:$0xff]  }
  0x59   :  { %1331 = vmatprep.subr.bf16.mxu0 %v3534_v36  ;;  %1503 = vmatprep.subr.bf16.mxu1 %v3536_v37  ;;  %v3632_v36 = vld [vmem:[#allocation2 + $0x30c] ss:$16 sps:$4 sm:$0xff]   ;;  %v3627_v37 = vld [vmem:[#allocation2 + $0x300] ss:$16 sps:$4 sm:$0xff]  }
  0x5c   :  { %1332 = vmatpush1.bf16.msra.mxu0 %v3538_v38  ;;  %1504 = vmatpush1.bf16.msra.mxu1 %v3539_v39  ;;  %v3630_v38 = vld [vmem:[#allocation2 + $0x308] ss:$16 sps:$4 sm:$0xff]   ;;  %v3635_v39 = vld [vmem:[#allocation2 + $0x324] ss:$16 sps:$4 sm:$0xff]  }
  0x5d   :  { %1333 = vmatprep.subr.bf16.mxu0 %v3540_v40  ;;  %1505 = vmatprep.subr.bf16.mxu1 %v3542_v41  ;;  %v3638_v40 = vld [vmem:[#allocation2 + $0x32c] ss:$16 sps:$4 sm:$0xff]   ;;  %v3633_v41 = vld [vmem:[#allocation2 + $0x320] ss:$16 sps:$4 sm:$0xff]  }
  0x60   :  { %1334 = vmatpush1.bf16.msra.mxu0 %v3544_v42  ;;  %1506 = vmatpush1.bf16.msra.mxu1 %v3545_v43  ;;  %v3636_v42 = vld [vmem:[#allocation2 + $0x328] ss:$16 sps:$4 sm:$0xff]   ;;  %v3641_v43 = vld [vmem:[#allocation2 + $0x344] ss:$16 sps:$4 sm:$0xff]  }
  0x61   :  { %1335 = vmatprep.subr.bf16.mxu0 %v3546_v44  ;;  %1507 = vmatprep.subr.bf16.mxu1 %v3548_v45  ;;  %v3644_v44 = vld [vmem:[#allocation2 + $0x34c] ss:$16 sps:$4 sm:$0xff]   ;;  %v3639_v45 = vld [vmem:[#allocation2 + $0x340] ss:$16 sps:$4 sm:$0xff]  }
  0x64   :  { %1336 = vmatpush1.bf16.msra.mxu0 %v3550_v46  ;;  %1508 = vmatpush1.bf16.msra.mxu1 %v3551_v47  ;;  %v3642_v46 = vld [vmem:[#allocation2 + $0x348] ss:$16 sps:$4 sm:$0xff]   ;;  %v3647_v47 = vld [vmem:[#allocation2 + $0x364] ss:$16 sps:$4 sm:$0xff]  }
  0x65   :  { %1337 = vmatprep.subr.bf16.mxu0 %v3552_v49  ;;  %1509 = vmatprep.subr.bf16.mxu1 %v3554_v50  ;;  %v3645_v49 = vld [vmem:[#allocation2 + $0x360] ss:$16 sps:$4 sm:$0xff]   ;;  %v3648_v50 = vld [vmem:[#allocation2 + $0x368] ss:$16 sps:$4 sm:$0xff]  }
  0x68   :  { %1338 = vmatpush1.bf16.msra.mxu0 %v3556_v51  ;;  %1510 = vmatpush1.bf16.msra.mxu1 %v3557_v52  ;;  %v3653_v51 = vld [vmem:[#allocation2 + $0x384] ss:$16 sps:$4 sm:$0xff]   ;;  %v3656_v52 = vld [vmem:[#allocation2 + $0x38c] ss:$16 sps:$4 sm:$0xff]  }
  0x69   :  { %1339 = vmatprep.subr.bf16.mxu0 %v3558_v53  ;;  %1511 = vmatprep.subr.bf16.mxu1 %v3560_v54  ;;  %v3651_v53 = vld [vmem:[#allocation2 + $0x380] ss:$16 sps:$4 sm:$0xff]   ;;  %v3654_v54 = vld [vmem:[#allocation2 + $0x388] ss:$16 sps:$4 sm:$0xff]  }
  0x6c   :  { %1340 = vmatpush1.bf16.msra.mxu0 %v3562_v55  ;;  %1512 = vmatpush1.bf16.msra.mxu1 %v3563_v56  ;;  %v3659_v55 = vld [vmem:[#allocation2 + $0x3a4] ss:$16 sps:$4 sm:$0xff]   ;;  %v3662_v56 = vld [vmem:[#allocation2 + $0x3ac] ss:$16 sps:$4 sm:$0xff]  }
  0x6d   :  { %1341 = vmatprep.subr.bf16.mxu0 %v3564_v57  ;;  %1513 = vmatprep.subr.bf16.mxu1 %v3566_v58  ;;  %v3657_v57 = vld [vmem:[#allocation2 + $0x3a0] ss:$16 sps:$4 sm:$0xff]   ;;  %v3660_v58 = vld [vmem:[#allocation2 + $0x3a8] ss:$16 sps:$4 sm:$0xff]  }
  0x70   :  { %1342 = vmatpush1.bf16.msra.mxu0 %v3568_v59  ;;  %1514 = vmatpush1.bf16.msra.mxu1 %v3569_v60  ;;  %v3665_v59 = vld [vmem:[#allocation2 + $0x3c4] ss:$16 sps:$4 sm:$0xff]   ;;  %v3668_v60 = vld [vmem:[#allocation2 + $0x3cc] ss:$16 sps:$4 sm:$0xff]  }
  0x71   :  { %1343 = vmatprep.subr.bf16.mxu0 %v3570_v61  ;;  %1515 = vmatprep.subr.bf16.mxu1 %v3572_v62  ;;  %v3663_v61 = vld [vmem:[#allocation2 + $0x3c0] ss:$16 sps:$4 sm:$0xff]   ;;  %v3666_v62 = vld [vmem:[#allocation2 + $0x3c8] ss:$16 sps:$4 sm:$0xff]  }
  0x74   :  { %1344 = vmatpush1.bf16.msra.mxu0 %v3574_v63  ;;  %1516 = vmatpush1.bf16.msra.mxu1 %v3575_v0  ;;  %v3671_v63 = vld [vmem:[#allocation2 + $0x3e4] ss:$16 sps:$4 sm:$0xff]   ;;  %v3674_v0 = vld [vmem:[#allocation2 + $0x3ec] ss:$16 sps:$4 sm:$0xff]  }
  0x75   :  { %1356 = vmatprep.subr.bf16.mxu0 %v3581_v1  ;;  %1528 = vmatprep.subr.bf16.mxu1 %v3584_v2  ;;  %v3669_v1 = vld [vmem:[#allocation2 + $0x3e0] ss:$16 sps:$4 sm:$0xff]   ;;  %v3672_v2 = vld [vmem:[#allocation2 + $0x3e8] ss:$16 sps:$4 sm:$0xff]  }
  0x77   :  { %1346 = vmatmul.mubr.bf16.vlgmr.msra.gmra.mrb[0].mxu0 %v3576_v3  ;;  %1518 = vmatmul.mubr.bf16.vlgmr.msra.gmra.mrb[0].mxu1 %v3576_v3  ;;  %v3680_v3 = vld [vmem:[#allocation2 + $0x404] ss:$16 sps:$4 sm:$0xff]  }
  0x78   :  { %1357 = vmatpush1.bf16.msra.mxu0 %v3579_v4  ;;  %1529 = vmatpush1.bf16.msra.mxu1 %v3582_v5  ;;  %v3683_v4 = vld [vmem:[#allocation2 + $0x40c] ss:$16 sps:$4 sm:$0xff]   ;;  %v3675_v5 = vld [vmem:[%s4239_s0 + $0x8] ss:$28 sps:$4 sm:$0xff]  }
  0x79   :  { %1358 = vmatprep.subr.bf16.mxu0 %v3587_v6  ;;  %1530 = vmatprep.subr.bf16.mxu1 %v3590_v7  ;;  %v3678_v6 = vld [vmem:[#allocation2 + $0x400] ss:$16 sps:$4 sm:$0xff]   ;;  %v3681_v7 = vld [vmem:[#allocation2 + $0x408] ss:$16 sps:$4 sm:$0xff]  }
  0x7a   :  { %1388 = vmatprep.mubr.bf16.mxu0 %v3677_v30  ;;  %1560 = vmatprep.mubr.bf16.mxu1 %v3677_v30  ;;  %v3719_v30 = vld [vmem:[#allocation2 + $0x4cc] ss:$16 sps:$4 sm:$0xff]  }
  0x7c   :  { %1359 = vmatpush1.bf16.msra.mxu0 %v3585_v8  ;;  %1531 = vmatpush1.bf16.msra.mxu1 %v3588_v9  ;;  %v3686_v8 = vld [vmem:[#allocation2 + $0x424] ss:$16 sps:$4 sm:$0xff]   ;;  %v3689_v9 = vld [vmem:[#allocation2 + $0x42c] ss:$16 sps:$4 sm:$0xff]  }
  0x7d   :  { %1360 = vmatprep.subr.bf16.mxu0 %v3593_v10  ;;  %1532 = vmatprep.subr.bf16.mxu1 %v3596_v11  ;;  %v3684_v10 = vld [vmem:[#allocation2 + $0x420] ss:$16 sps:$4 sm:$0xff]   ;;  %v3687_v11 = vld [vmem:[#allocation2 + $0x428] ss:$16 sps:$4 sm:$0xff]  }
  0x80   :  { %1361 = vmatpush1.bf16.msra.mxu0 %v3591_v12  ;;  %1533 = vmatpush1.bf16.msra.mxu1 %v3594_v13  ;;  %v3776_v12 = vld [vmem:[%s4239_s0 + $0x14] ss:$28 sps:$4 sm:$0xff]  }
  0x81   :  { %1362 = vmatprep.subr.bf16.mxu0 %v3599_v14  ;;  %1534 = vmatprep.subr.bf16.mxu1 %v3602_v15  ;;  %v3692_v13 = vld [vmem:[#allocation2 + $0x444] ss:$16 sps:$4 sm:$0xff]   ;;  %v3695_v14 = vld [vmem:[#allocation2 + $0x44c] ss:$16 sps:$4 sm:$0xff]   ;;  %v3690_v15 = vld [vmem:[#allocation2 + $0x440] ss:$16 sps:$4 sm:$0xff]  }
  0x84   :  { %1363 = vmatpush1.bf16.msra.mxu0 %v3597_v16  ;;  %1535 = vmatpush1.bf16.msra.mxu1 %v3600_v17  ;;  %v3693_v16 = vld [vmem:[#allocation2 + $0x448] ss:$16 sps:$4 sm:$0xff]   ;;  %v3698_v17 = vld [vmem:[#allocation2 + $0x464] ss:$16 sps:$4 sm:$0xff]  }
  0x85   :  { %1364 = vmatprep.subr.bf16.mxu0 %v3605_v18  ;;  %1536 = vmatprep.subr.bf16.mxu1 %v3608_v19  ;;  %v3701_v18 = vld [vmem:[#allocation2 + $0x46c] ss:$16 sps:$4 sm:$0xff]   ;;  %v3696_v19 = vld [vmem:[#allocation2 + $0x460] ss:$16 sps:$4 sm:$0xff]  }
  0x88   :  { %1365 = vmatpush1.bf16.msra.mxu0 %v3603_v20  ;;  %1537 = vmatpush1.bf16.msra.mxu1 %v3606_v21  ;;  %v3699_v20 = vld [vmem:[#allocation2 + $0x468] ss:$16 sps:$4 sm:$0xff]   ;;  %v3704_v21 = vld [vmem:[#allocation2 + $0x484] ss:$16 sps:$4 sm:$0xff]  }
  0x89   :  { %1366 = vmatprep.subr.bf16.mxu0 %v3611_v22  ;;  %1538 = vmatprep.subr.bf16.mxu1 %v3614_v23  ;;  %v3707_v22 = vld [vmem:[#allocation2 + $0x48c] ss:$16 sps:$4 sm:$0xff]   ;;  %v3702_v23 = vld [vmem:[#allocation2 + $0x480] ss:$16 sps:$4 sm:$0xff]  }
  0x8c   :  { %1367 = vmatpush1.bf16.msra.mxu0 %v3609_v24  ;;  %1539 = vmatpush1.bf16.msra.mxu1 %v3612_v25  ;;  %v3705_v24 = vld [vmem:[#allocation2 + $0x488] ss:$16 sps:$4 sm:$0xff]   ;;  %v3710_v25 = vld [vmem:[#allocation2 + $0x4a4] ss:$16 sps:$4 sm:$0xff]  }
  0x8d   :  { %1368 = vmatprep.subr.bf16.mxu0 %v3617_v26  ;;  %1540 = vmatprep.subr.bf16.mxu1 %v3620_v27  ;;  %v3713_v26 = vld [vmem:[#allocation2 + $0x4ac] ss:$16 sps:$4 sm:$0xff]   ;;  %v3708_v27 = vld [vmem:[#allocation2 + $0x4a0] ss:$16 sps:$4 sm:$0xff]  }
  0x90   :  { %1369 = vmatpush1.bf16.msra.mxu0 %v3615_v28  ;;  %1541 = vmatpush1.bf16.msra.mxu1 %v3618_v29  ;;  %v3711_v28 = vld [vmem:[#allocation2 + $0x4a8] ss:$16 sps:$4 sm:$0xff]   ;;  %v3716_v29 = vld [vmem:[#allocation2 + $0x4c4] ss:$16 sps:$4 sm:$0xff]  }
  0x91   :  { %1370 = vmatprep.subr.bf16.mxu0 %v3623_v31  ;;  %1542 = vmatprep.subr.bf16.mxu1 %v3626_v32  ;;  %v3714_v31 = vld [vmem:[#allocation2 + $0x4c0] ss:$16 sps:$4 sm:$0xff]   ;;  %v3717_v32 = vld [vmem:[#allocation2 + $0x4c8] ss:$16 sps:$4 sm:$0xff]  }
  0x94   :  { %1371 = vmatpush1.bf16.msra.mxu0 %v3621_v33  ;;  %1543 = vmatpush1.bf16.msra.mxu1 %v3624_v34  ;;  %v3722_v33 = vld [vmem:[#allocation2 + $0x4e4] ss:$16 sps:$4 sm:$0xff]   ;;  %v3725_v34 = vld [vmem:[#allocation2 + $0x4ec] ss:$16 sps:$4 sm:$0xff]  }
  0x95   :  { %1372 = vmatprep.subr.bf16.mxu0 %v3629_v35  ;;  %1544 = vmatprep.subr.bf16.mxu1 %v3632_v36  ;;  %v3720_v35 = vld [vmem:[#allocation2 + $0x4e0] ss:$16 sps:$4 sm:$0xff]   ;;  %v3723_v36 = vld [vmem:[#allocation2 + $0x4e8] ss:$16 sps:$4 sm:$0xff]  }
  0x98   :  { %1373 = vmatpush1.bf16.msra.mxu0 %v3627_v37  ;;  %1545 = vmatpush1.bf16.msra.mxu1 %v3630_v38  ;;  %v3728_v37 = vld [vmem:[#allocation2 + $0x504] ss:$16 sps:$4 sm:$0xff]   ;;  %v3731_v38 = vld [vmem:[#allocation2 + $0x50c] ss:$16 sps:$4 sm:$0xff]  }
  0x99   :  { %1374 = vmatprep.subr.bf16.mxu0 %v3635_v39  ;;  %1546 = vmatprep.subr.bf16.mxu1 %v3638_v40  ;;  %v3726_v39 = vld [vmem:[#allocation2 + $0x500] ss:$16 sps:$4 sm:$0xff]   ;;  %v3729_v40 = vld [vmem:[#allocation2 + $0x508] ss:$16 sps:$4 sm:$0xff]  }
  0x9c   :  { %1375 = vmatpush1.bf16.msra.mxu0 %v3633_v41  ;;  %1547 = vmatpush1.bf16.msra.mxu1 %v3636_v42  ;;  %v3734_v41 = vld [vmem:[#allocation2 + $0x524] ss:$16 sps:$4 sm:$0xff]   ;;  %v3737_v42 = vld [vmem:[#allocation2 + $0x52c] ss:$16 sps:$4 sm:$0xff]  }
  0x9d   :  { %1376 = vmatprep.subr.bf16.mxu0 %v3641_v43  ;;  %1548 = vmatprep.subr.bf16.mxu1 %v3644_v44  ;;  %v3732_v43 = vld [vmem:[#allocation2 + $0x520] ss:$16 sps:$4 sm:$0xff]   ;;  %v3735_v44 = vld [vmem:[#allocation2 + $0x528] ss:$16 sps:$4 sm:$0xff]  }
  0xa0   :  { %1377 = vmatpush1.bf16.msra.mxu0 %v3639_v45  ;;  %1549 = vmatpush1.bf16.msra.mxu1 %v3642_v46  ;;  %v3740_v45 = vld [vmem:[#allocation2 + $0x544] ss:$16 sps:$4 sm:$0xff]   ;;  %v3743_v46 = vld [vmem:[#allocation2 + $0x54c] ss:$16 sps:$4 sm:$0xff]  }
  0xa1   :  { %1378 = vmatprep.subr.bf16.mxu0 %v3647_v47  ;;  %1550 = vmatprep.subr.bf16.mxu1 %v3650_v48  ;;  %v3738_v47 = vld [vmem:[#allocation2 + $0x540] ss:$16 sps:$4 sm:$0xff]   ;;  %v3741_v48 = vld [vmem:[#allocation2 + $0x548] ss:$16 sps:$4 sm:$0xff]  }
  0xa4   :  { %1379 = vmatpush1.bf16.msra.mxu0 %v3645_v49  ;;  %1551 = vmatpush1.bf16.msra.mxu1 %v3648_v50  ;;  %v3746_v49 = vld [vmem:[#allocation2 + $0x564] ss:$16 sps:$4 sm:$0xff]   ;;  %v3749_v50 = vld [vmem:[#allocation2 + $0x56c] ss:$16 sps:$4 sm:$0xff]  }
  0xa5   :  { %1380 = vmatprep.subr.bf16.mxu0 %v3653_v51  ;;  %1552 = vmatprep.subr.bf16.mxu1 %v3656_v52  ;;  %v3744_v51 = vld [vmem:[#allocation2 + $0x560] ss:$16 sps:$4 sm:$0xff]   ;;  %v3747_v52 = vld [vmem:[#allocation2 + $0x568] ss:$16 sps:$4 sm:$0xff]  }
  0xa8   :  { %1381 = vmatpush1.bf16.msra.mxu0 %v3651_v53  ;;  %1553 = vmatpush1.bf16.msra.mxu1 %v3654_v54  ;;  %v3752_v53 = vld [vmem:[#allocation2 + $0x584] ss:$16 sps:$4 sm:$0xff]   ;;  %v3755_v54 = vld [vmem:[#allocation2 + $0x58c] ss:$16 sps:$4 sm:$0xff]  }
  0xa9   :  { %1382 = vmatprep.subr.bf16.mxu0 %v3659_v55  ;;  %1554 = vmatprep.subr.bf16.mxu1 %v3662_v56  ;;  %v3750_v55 = vld [vmem:[#allocation2 + $0x580] ss:$16 sps:$4 sm:$0xff]   ;;  %v3753_v56 = vld [vmem:[#allocation2 + $0x588] ss:$16 sps:$4 sm:$0xff]  }
  0xac   :  { %1383 = vmatpush1.bf16.msra.mxu0 %v3657_v57  ;;  %1555 = vmatpush1.bf16.msra.mxu1 %v3660_v58  ;;  %v3758_v57 = vld [vmem:[#allocation2 + $0x5a4] ss:$16 sps:$4 sm:$0xff]   ;;  %v3761_v58 = vld [vmem:[#allocation2 + $0x5ac] ss:$16 sps:$4 sm:$0xff]  }
  0xad   :  { %1384 = vmatprep.subr.bf16.mxu0 %v3665_v59  ;;  %1556 = vmatprep.subr.bf16.mxu1 %v3668_v60  ;;  %v3756_v59 = vld [vmem:[#allocation2 + $0x5a0] ss:$16 sps:$4 sm:$0xff]   ;;  %v3759_v60 = vld [vmem:[#allocation2 + $0x5a8] ss:$16 sps:$4 sm:$0xff]  }
  0xb0   :  { %1385 = vmatpush1.bf16.msra.mxu0 %v3663_v61  ;;  %1557 = vmatpush1.bf16.msra.mxu1 %v3666_v62  ;;  %v3764_v61 = vld [vmem:[#allocation2 + $0x5c4] ss:$16 sps:$4 sm:$0xff]   ;;  %v3767_v62 = vld [vmem:[#allocation2 + $0x5cc] ss:$16 sps:$4 sm:$0xff]  }
  0xb1   :  { %1386 = vmatprep.subr.bf16.mxu0 %v3671_v63  ;;  %1558 = vmatprep.subr.bf16.mxu1 %v3674_v0  ;;  %v3762_v63 = vld [vmem:[#allocation2 + $0x5c0] ss:$16 sps:$4 sm:$0xff]   ;;  %v3765_v0 = vld [vmem:[#allocation2 + $0x5c8] ss:$16 sps:$4 sm:$0xff]  }
  0xb4   :  { %1387 = vmatpush1.bf16.msra.mxu0 %v3669_v1  ;;  %1559 = vmatpush1.bf16.msra.mxu1 %v3672_v2  ;;  %v3770_v1 = vld [vmem:[#allocation2 + $0x5e4] ss:$16 sps:$4 sm:$0xff]   ;;  %v3773_v2 = vld [vmem:[#allocation2 + $0x5ec] ss:$16 sps:$4 sm:$0xff]  }
  0xb5   :  { %1399 = vmatprep.subr.bf16.mxu0 %v3680_v3  ;;  %1571 = vmatprep.subr.bf16.mxu1 %v3683_v4  ;;  %v3768_v3 = vld [vmem:[#allocation2 + $0x5e0] ss:$16 sps:$4 sm:$0xff]   ;;  %v3771_v4 = vld [vmem:[#allocation2 + $0x5e8] ss:$16 sps:$4 sm:$0xff]  }
  0xb7   :  { %1389 = vmatmul.mubr.bf16.vlgmr.msra.gmra.mrb[0].mxu0 %v3675_v5  ;;  %1561 = vmatmul.mubr.bf16.vlgmr.msra.gmra.mrb[0].mxu1 %v3675_v5  ;;  %v3779_v5 = vld [vmem:[#allocation2 + $0x604] ss:$16 sps:$4 sm:$0xff]  }
  0xb8   :  { %1400 = vmatpush1.bf16.msra.mxu0 %v3678_v6  ;;  %1572 = vmatpush1.bf16.msra.mxu1 %v3681_v7  ;;  %v3782_v6 = vld [vmem:[#allocation2 + $0x60c] ss:$16 sps:$4 sm:$0xff]  }
  0xb9   :  { %1401 = vmatprep.subr.bf16.mxu0 %v3686_v8  ;;  %1573 = vmatprep.subr.bf16.mxu1 %v3689_v9  ;;  %v3774_v7 = vld [vmem:[%s4239_s0 + $0x10] ss:$28 sps:$4 sm:$0xff]   ;;  %v3780_v9 = vld [vmem:[#allocation2 + $0x608] ss:$16 sps:$4 sm:$0xff]  }
  0xba   :  { %1431 = vmatprep.mubr.bf16.mxu0 %v3776_v12  ;;  %1603 = vmatprep.mubr.bf16.mxu1 %v3776_v12  ;;  %v3777_v8 = vld [vmem:[#allocation2 + $0x600] ss:$16 sps:$4 sm:$0xff]   ;;  %v4093_v12 = vmov 0  }
  0xbc   :  { %1402 = vmatpush1.bf16.msra.mxu0 %v3684_v10  ;;  %1574 = vmatpush1.bf16.msra.mxu1 %v3687_v11  ;;  %v3786_v10 = vld [vmem:[#allocation4 + $0x4] ss:$16 sps:$4 sm:$0xff]   ;;  %v3789_v11 = vld [vmem:[#allocation4 + $0xc] ss:$16 sps:$4 sm:$0xff]  }
  0xbd   :  { %1403 = vmatprep.subr.bf16.mxu0 %v3692_v13  ;;  %1575 = vmatprep.subr.bf16.mxu1 %v3695_v14  ;;  %v3783_v13 = vld [vmem:[%s4239_s0 + $0x18] ss:$28 sps:$4 sm:$0xff]   ;;  %v3784_v14 = vld [vmem:[#allocation4] ss:$16 sps:$4 sm:$0xff]  }
  0xc0   :  { %1404 = vmatpush1.bf16.msra.mxu0 %v3690_v15  ;;  %1576 = vmatpush1.bf16.msra.mxu1 %v3693_v16  ;;  %v3787_v15 = vld [vmem:[#allocation4 + $0x8] ss:$16 sps:$4 sm:$0xff]   ;;  %v3792_v16 = vld [vmem:[#allocation4 + $0x24] ss:$16 sps:$4 sm:$0xff]  }
  0xc1   :  { %1405 = vmatprep.subr.bf16.mxu0 %v3698_v17  ;;  %1577 = vmatprep.subr.bf16.mxu1 %v3701_v18  ;;  %v3795_v17 = vld [vmem:[#allocation4 + $0x2c] ss:$16 sps:$4 sm:$0xff]   ;;  %v3790_v18 = vld [vmem:[#allocation4 + $0x20] ss:$16 sps:$4 sm:$0xff]  }
  0xc4   :  { %1406 = vmatpush1.bf16.msra.mxu0 %v3696_v19  ;;  %1578 = vmatpush1.bf16.msra.mxu1 %v3699_v20  ;;  %v3793_v19 = vld [vmem:[#allocation4 + $0x28] ss:$16 sps:$4 sm:$0xff]   ;;  %v3798_v20 = vld [vmem:[#allocation4 + $0x44] ss:$16 sps:$4 sm:$0xff]  }
  0xc5   :  { %1407 = vmatprep.subr.bf16.mxu0 %v3704_v21  ;;  %1579 = vmatprep.subr.bf16.mxu1 %v3707_v22  ;;  %v3801_v21 = vld [vmem:[#allocation4 + $0x4c] ss:$16 sps:$4 sm:$0xff]   ;;  %v3796_v22 = vld [vmem:[#allocation4 + $0x40] ss:$16 sps:$4 sm:$0xff]  }
  0xc8   :  { %1408 = vmatpush1.bf16.msra.mxu0 %v3702_v23  ;;  %1580 = vmatpush1.bf16.msra.mxu1 %v3705_v24  ;;  %v3799_v23 = vld [vmem:[#allocation4 + $0x48] ss:$16 sps:$4 sm:$0xff]   ;;  %v3804_v24 = vld [vmem:[#allocation4 + $0x64] ss:$16 sps:$4 sm:$0xff]  }
  0xc9   :  { %1409 = vmatprep.subr.bf16.mxu0 %v3710_v25  ;;  %1581 = vmatprep.subr.bf16.mxu1 %v3713_v26  ;;  %v3807_v25 = vld [vmem:[#allocation4 + $0x6c] ss:$16 sps:$4 sm:$0xff]   ;;  %v3802_v26 = vld [vmem:[#allocation4 + $0x60] ss:$16 sps:$4 sm:$0xff]  }
  0xcc   :  { %1410 = vmatpush1.bf16.msra.mxu0 %v3708_v27  ;;  %1582 = vmatpush1.bf16.msra.mxu1 %v3711_v28  ;;  %v3805_v27 = vld [vmem:[#allocation4 + $0x68] ss:$16 sps:$4 sm:$0xff]   ;;  %v3810_v28 = vld [vmem:[#allocation4 + $0x84] ss:$16 sps:$4 sm:$0xff]  }
  0xcd   :  { %1411 = vmatprep.subr.bf16.mxu0 %v3716_v29  ;;  %1583 = vmatprep.subr.bf16.mxu1 %v3719_v30  ;;  %v3813_v29 = vld [vmem:[#allocation4 + $0x8c] ss:$16 sps:$4 sm:$0xff]   ;;  %v3808_v30 = vld [vmem:[#allocation4 + $0x80] ss:$16 sps:$4 sm:$0xff]  }
  0xd0   :  { %1412 = vmatpush1.bf16.msra.mxu0 %v3714_v31  ;;  %1584 = vmatpush1.bf16.msra.mxu1 %v3717_v32  ;;  %v3811_v31 = vld [vmem:[#allocation4 + $0x88] ss:$16 sps:$4 sm:$0xff]   ;;  %v3816_v32 = vld [vmem:[#allocation4 + $0xa4] ss:$16 sps:$4 sm:$0xff]  }
  0xd1   :  { %1413 = vmatprep.subr.bf16.mxu0 %v3722_v33  ;;  %1585 = vmatprep.subr.bf16.mxu1 %v3725_v34  ;;  %v3819_v33 = vld [vmem:[#allocation4 + $0xac] ss:$16 sps:$4 sm:$0xff]   ;;  %v3814_v34 = vld [vmem:[#allocation4 + $0xa0] ss:$16 sps:$4 sm:$0xff]  }
  0xd4   :  { %1414 = vmatpush1.bf16.msra.mxu0 %v3720_v35  ;;  %1586 = vmatpush1.bf16.msra.mxu1 %v3723_v36  ;;  %v3817_v35 = vld [vmem:[#allocation4 + $0xa8] ss:$16 sps:$4 sm:$0xff]   ;;  %v3822_v36 = vld [vmem:[#allocation4 + $0xc4] ss:$16 sps:$4 sm:$0xff]  }
  0xd5   :  { %1415 = vmatprep.subr.bf16.mxu0 %v3728_v37  ;;  %1587 = vmatprep.subr.bf16.mxu1 %v3731_v38  ;;  %v3825_v37 = vld [vmem:[#allocation4 + $0xcc] ss:$16 sps:$4 sm:$0xff]   ;;  %v3820_v38 = vld [vmem:[#allocation4 + $0xc0] ss:$16 sps:$4 sm:$0xff]  }
  0xd8   :  { %1416 = vmatpush1.bf16.msra.mxu0 %v3726_v39  ;;  %1588 = vmatpush1.bf16.msra.mxu1 %v3729_v40  ;;  %v3823_v39 = vld [vmem:[#allocation4 + $0xc8] ss:$16 sps:$4 sm:$0xff]   ;;  %v3828_v40 = vld [vmem:[#allocation4 + $0xe4] ss:$16 sps:$4 sm:$0xff]  }
  0xd9   :  { %1417 = vmatprep.subr.bf16.mxu0 %v3734_v41  ;;  %1589 = vmatprep.subr.bf16.mxu1 %v3737_v42  ;;  %v3831_v41 = vld [vmem:[#allocation4 + $0xec] ss:$16 sps:$4 sm:$0xff]   ;;  %v3826_v42 = vld [vmem:[#allocation4 + $0xe0] ss:$16 sps:$4 sm:$0xff]  }
  0xdc   :  { %1418 = vmatpush1.bf16.msra.mxu0 %v3732_v43  ;;  %1590 = vmatpush1.bf16.msra.mxu1 %v3735_v44  ;;  %v3829_v43 = vld [vmem:[#allocation4 + $0xe8] ss:$16 sps:$4 sm:$0xff]   ;;  %v3834_v44 = vld [vmem:[#allocation4 + $0x104] ss:$16 sps:$4 sm:$0xff]  }
  0xdd   :  { %1419 = vmatprep.subr.bf16.mxu0 %v3740_v45  ;;  %1591 = vmatprep.subr.bf16.mxu1 %v3743_v46  ;;  %v3837_v45 = vld [vmem:[#allocation4 + $0x10c] ss:$16 sps:$4 sm:$0xff]   ;;  %v3832_v46 = vld [vmem:[#allocation4 + $0x100] ss:$16 sps:$4 sm:$0xff]  }
  0xe0   :  { %1420 = vmatpush1.bf16.msra.mxu0 %v3738_v47  ;;  %1592 = vmatpush1.bf16.msra.mxu1 %v3741_v48  ;;  %v3835_v47 = vld [vmem:[#allocation4 + $0x108] ss:$16 sps:$4 sm:$0xff]   ;;  %v3840_v48 = vld [vmem:[#allocation4 + $0x124] ss:$16 sps:$4 sm:$0xff]  }
  0xe1   :  { %1421 = vmatprep.subr.bf16.mxu0 %v3746_v49  ;;  %1593 = vmatprep.subr.bf16.mxu1 %v3749_v50  ;;  %v3843_v49 = vld [vmem:[#allocation4 + $0x12c] ss:$16 sps:$4 sm:$0xff]   ;;  %v3838_v50 = vld [vmem:[#allocation4 + $0x120] ss:$16 sps:$4 sm:$0xff]  }
  0xe4   :  { %1422 = vmatpush1.bf16.msra.mxu0 %v3744_v51  ;;  %1594 = vmatpush1.bf16.msra.mxu1 %v3747_v52  ;;  %v3841_v51 = vld [vmem:[#allocation4 + $0x128] ss:$16 sps:$4 sm:$0xff]   ;;  %v3846_v52 = vld [vmem:[#allocation4 + $0x144] ss:$16 sps:$4 sm:$0xff]  }
  0xe5   :  { %1423 = vmatprep.subr.bf16.mxu0 %v3752_v53  ;;  %1595 = vmatprep.subr.bf16.mxu1 %v3755_v54  ;;  %v3849_v53 = vld [vmem:[#allocation4 + $0x14c] ss:$16 sps:$4 sm:$0xff]   ;;  %v3844_v54 = vld [vmem:[#allocation4 + $0x140] ss:$16 sps:$4 sm:$0xff]  }
  0xe8   :  { %1424 = vmatpush1.bf16.msra.mxu0 %v3750_v55  ;;  %1596 = vmatpush1.bf16.msra.mxu1 %v3753_v56  ;;  %v3847_v55 = vld [vmem:[#allocation4 + $0x148] ss:$16 sps:$4 sm:$0xff]   ;;  %v3852_v56 = vld [vmem:[#allocation4 + $0x164] ss:$16 sps:$4 sm:$0xff]  }
  0xe9   :  { %1425 = vmatprep.subr.bf16.mxu0 %v3758_v57  ;;  %1597 = vmatprep.subr.bf16.mxu1 %v3761_v58  ;;  %v3855_v57 = vld [vmem:[#allocation4 + $0x16c] ss:$16 sps:$4 sm:$0xff]   ;;  %v3850_v58 = vld [vmem:[#allocation4 + $0x160] ss:$16 sps:$4 sm:$0xff]  }
  0xec   :  { %1426 = vmatpush1.bf16.msra.mxu0 %v3756_v59  ;;  %1598 = vmatpush1.bf16.msra.mxu1 %v3759_v60  ;;  %v3853_v59 = vld [vmem:[#allocation4 + $0x168] ss:$16 sps:$4 sm:$0xff]   ;;  %v3858_v60 = vld [vmem:[#allocation4 + $0x184] ss:$16 sps:$4 sm:$0xff]  }
  0xed   :  { %1427 = vmatprep.subr.bf16.mxu0 %v3764_v61  ;;  %1599 = vmatprep.subr.bf16.mxu1 %v3767_v62  ;;  %v3861_v61 = vld [vmem:[#allocation4 + $0x18c] ss:$16 sps:$4 sm:$0xff]   ;;  %v3856_v62 = vld [vmem:[#allocation4 + $0x180] ss:$16 sps:$4 sm:$0xff]  }
  0xf0   :  { %1428 = vmatpush1.bf16.msra.mxu0 %v3762_v63  ;;  %1600 = vmatpush1.bf16.msra.mxu1 %v3765_v0  ;;  %v3859_v63 = vld [vmem:[#allocation4 + $0x188] ss:$16 sps:$4 sm:$0xff]   ;;  %v3864_v0 = vld [vmem:[#allocation4 + $0x1a4] ss:$16 sps:$4 sm:$0xff]  }
  0xf1   :  { %1429 = vmatprep.subr.bf16.mxu0 %v3770_v1  ;;  %1601 = vmatprep.subr.bf16.mxu1 %v3773_v2  ;;  %v3867_v1 = vld [vmem:[#allocation4 + $0x1ac] ss:$16 sps:$4 sm:$0xff]   ;;  %v3862_v2 = vld [vmem:[#allocation4 + $0x1a0] ss:$16 sps:$4 sm:$0xff]  }
  0xf4   :  { %1430 = vmatpush1.bf16.msra.mxu0 %v3768_v3  ;;  %1602 = vmatpush1.bf16.msra.mxu1 %v3771_v4  ;;  %v3865_v3 = vld [vmem:[#allocation4 + $0x1a8] ss:$16 sps:$4 sm:$0xff]   ;;  %v3870_v4 = vld [vmem:[#allocation4 + $0x1c4] ss:$16 sps:$4 sm:$0xff]  }
  0xf5   :  { %1442 = vmatprep.subr.bf16.mxu0 %v3779_v5  ;;  %1614 = vmatprep.subr.bf16.mxu1 %v3782_v6  ;;  %v3873_v5 = vld [vmem:[#allocation4 + $0x1cc] ss:$16 sps:$4 sm:$0xff]   ;;  %v3868_v6 = vld [vmem:[#allocation4 + $0x1c0] ss:$16 sps:$4 sm:$0xff]  }
  0xf7   :  { %1432 = vmatmul.mubr.bf16.vlgmr.msra.gmra.mrb[0].mxu0 %v3774_v7  ;;  %1604 = vmatmul.mubr.bf16.vlgmr.msra.gmra.mrb[0].mxu1 %v3774_v7  ;;  %v3871_v7 = vld [vmem:[#allocation4 + $0x1c8] ss:$16 sps:$4 sm:$0xff]  }
  0xf8   :  { %1443 = vmatpush1.bf16.msra.mxu0 %v3777_v8  ;;  %1615 = vmatpush1.bf16.msra.mxu1 %v3780_v9  ;;  %v3876_v8 = vld [vmem:[#allocation4 + $0x1e4] ss:$16 sps:$4 sm:$0xff]   ;;  %v3879_v9 = vld [vmem:[#allocation4 + $0x1ec] ss:$16 sps:$4 sm:$0xff]  }
  0xf9   :  { %1474 = vmatprep.mubr.bf16.mxu0 %v4093_v12  ;;  %1646 = vmatprep.mubr.bf16.mxu1 %v4093_v12  ;;  %v3882_v12 = vld [vmem:[#allocation4 + $0x204] ss:$16 sps:$4 sm:$0xff]  }
  0xfa   :  { %2459 = vmatprep.subr.bf16.mxu0 %v3786_v10  ;;  %2545 = vmatprep.subr.bf16.mxu1 %v3789_v11  ;;  %v3874_v10 = vld [vmem:[#allocation4 + $0x1e0] ss:$16 sps:$4 sm:$0xff]   ;;  %v3877_v11 = vld [vmem:[#allocation4 + $0x1e8] ss:$16 sps:$4 sm:$0xff]  }
 0x103   :  { %3217 = vmatmul.mubr.msk.bf16.vlgmr.msra.gmra.mrb[0].mxu0 %vm1309_vm0, %v3783_v13  ;;  %3218 = vmatmul.mubr.msk.bf16.vlgmr.msra.gmra.mrb[0].mxu1 %vm1309_vm0, %v3783_v13  ;;  %v3885_v13 = vld [vmem:[#allocation4 + $0x20c] ss:$16 sps:$4 sm:$0xff]  }
 0x104   :  { %2460 = vmatpush1.bf16.msra.mxu0 %v3784_v14  ;;  %2546 = vmatpush1.bf16.msra.mxu1 %v3787_v15  ;;  %v274_v14 = vlaneseq }
 0x105   :  { %2461 = vmatprep.subr.bf16.mxu0 %v3792_v16  ;;  %2547 = vmatprep.subr.bf16.mxu1 %v3795_v17 }
 0x106   :  { %v4198_v15 = vshrl.u32 %v274_v14, 7  ;;  %v3919_v14 = vld [vmem:[#allocation4 + $0x2c8] ss:$16 sps:$4 sm:$0xff]  }
 0x108   :  { %2462 = vmatpush1.bf16.msra.mxu0 %v3790_v18  ;;  %2548 = vmatpush1.bf16.msra.mxu1 %v3793_v19  ;;  %v276_v16 = vsub.s32 0, %v4198_v15  ;;  %v284_v17 = vsub.s32 2, %v4198_v15  ;;  %v272_v18 = vld [vmem:[%s4241_s2] sm:$0xf]  ;;  %v280_v19 = vsub.s32 1, %v4198_v15 }
 0x109   :  { %2463 = vmatprep.subr.bf16.mxu0 %v3798_v20  ;;  %2549 = vmatprep.subr.bf16.mxu1 %v3801_v21  ;;  %v288_v20 = vsub.s32 3, %v4198_v15 }
 0x10a   :  { %v277_v21 = vrot.slane %v272_v18, %v276_v16 }
 0x10c   :  { %2464 = vmatpush1.bf16.msra.mxu0 %v3796_v22  ;;  %2550 = vmatpush1.bf16.msra.mxu1 %v3799_v23  ;;  %v285_v22 = vrot.slane %v272_v18, %v284_v17  ;;  %v281_v23 = vrot.slane %v272_v18, %v280_v19 }
 0x10d   :  { %2465 = vmatprep.subr.bf16.mxu0 %v3804_v24  ;;  %2551 = vmatprep.subr.bf16.mxu1 %v3807_v25  ;;  %v289_v24 = vrot.slane %v272_v18, %v288_v20  ;;  %v3924_v18 = vld [vmem:[#allocation4 + $0x2e4] ss:$16 sps:$4 sm:$0xff]  }
 0x110   :  { %2466 = vmatpush1.bf16.msra.mxu0 %v3802_v26  ;;  %2552 = vmatpush1.bf16.msra.mxu1 %v3805_v27 }
 0x111   :  { %2467 = vmatprep.subr.bf16.mxu0 %v3810_v28  ;;  %2553 = vmatprep.subr.bf16.mxu1 %v3813_v29 }
 0x114   :  { %2468 = vmatpush1.bf16.msra.mxu0 %v3808_v30  ;;  %2554 = vmatpush1.bf16.msra.mxu1 %v3811_v31 }
 0x115   :  { %2469 = vmatprep.subr.bf16.mxu0 %v3816_v32  ;;  %2555 = vmatprep.subr.bf16.mxu1 %v3819_v33 }
 0x118   :  { %2470 = vmatpush1.bf16.msra.mxu0 %v3814_v34  ;;  %2556 = vmatpush1.bf16.msra.mxu1 %v3817_v35 }
 0x119   :  { %2471 = vmatprep.subr.bf16.mxu0 %v3822_v36  ;;  %2557 = vmatprep.subr.bf16.mxu1 %v3825_v37 }
 0x11c   :  { %2472 = vmatpush1.bf16.msra.mxu0 %v3820_v38  ;;  %2558 = vmatpush1.bf16.msra.mxu1 %v3823_v39 }
 0x11d   :  { %2473 = vmatprep.subr.bf16.mxu0 %v3828_v40  ;;  %2559 = vmatprep.subr.bf16.mxu1 %v3831_v41 }
 0x120   :  { %2474 = vmatpush1.bf16.msra.mxu0 %v3826_v42  ;;  %2560 = vmatpush1.bf16.msra.mxu1 %v3829_v43 }
 0x121   :  { %2475 = vmatprep.subr.bf16.mxu0 %v3834_v44  ;;  %2561 = vmatprep.subr.bf16.mxu1 %v3837_v45 }
 0x124   :  { %2476 = vmatpush1.bf16.msra.mxu0 %v3832_v46  ;;  %2562 = vmatpush1.bf16.msra.mxu1 %v3835_v47 }
 0x125   :  { %2477 = vmatprep.subr.bf16.mxu0 %v3840_v48  ;;  %2563 = vmatprep.subr.bf16.mxu1 %v3843_v49 }
 0x128   :  { %2478 = vmatpush1.bf16.msra.mxu0 %v3838_v50  ;;  %2564 = vmatpush1.bf16.msra.mxu1 %v3841_v51 }
 0x129   :  { %2479 = vmatprep.subr.bf16.mxu0 %v3846_v52  ;;  %2565 = vmatprep.subr.bf16.mxu1 %v3849_v53  ;;  %v3880_v53 = vld [vmem:[#allocation4 + $0x200] ss:$16 sps:$4 sm:$0xff]  }
 0x12c   :  { %2480 = vmatpush1.bf16.msra.mxu0 %v3844_v54  ;;  %2566 = vmatpush1.bf16.msra.mxu1 %v3847_v55  ;;  %v3883_v54 = vld [vmem:[#allocation4 + $0x208] ss:$16 sps:$4 sm:$0xff]   ;;  %v3888_v55 = vld [vmem:[#allocation4 + $0x224] ss:$16 sps:$4 sm:$0xff]  }
 0x12d   :  { %2481 = vmatprep.subr.bf16.mxu0 %v3852_v56  ;;  %2567 = vmatprep.subr.bf16.mxu1 %v3855_v57  ;;  %v3891_v56 = vld [vmem:[#allocation4 + $0x22c] ss:$16 sps:$4 sm:$0xff]   ;;  %v3886_v57 = vld [vmem:[#allocation4 + $0x220] ss:$16 sps:$4 sm:$0xff]  }
 0x130   :  { %2482 = vmatpush1.bf16.msra.mxu0 %v3850_v58  ;;  %2568 = vmatpush1.bf16.msra.mxu1 %v3853_v59  ;;  %v3889_v58 = vld [vmem:[#allocation4 + $0x228] ss:$16 sps:$4 sm:$0xff]   ;;  %v3894_v59 = vld [vmem:[#allocation4 + $0x244] ss:$16 sps:$4 sm:$0xff]  }
 0x131   :  { %2483 = vmatprep.subr.bf16.mxu0 %v3858_v60  ;;  %2569 = vmatprep.subr.bf16.mxu1 %v3861_v61  ;;  %v3897_v60 = vld [vmem:[#allocation4 + $0x24c] ss:$16 sps:$4 sm:$0xff]   ;;  %v3892_v61 = vld [vmem:[#allocation4 + $0x240] ss:$16 sps:$4 sm:$0xff]  }
 0x134   :  { %2484 = vmatpush1.bf16.msra.mxu0 %v3856_v62  ;;  %2570 = vmatpush1.bf16.msra.mxu1 %v3859_v63  ;;  %v3895_v62 = vld [vmem:[#allocation4 + $0x248] ss:$16 sps:$4 sm:$0xff]   ;;  %v3900_v63 = vld [vmem:[#allocation4 + $0x264] ss:$16 sps:$4 sm:$0xff]  }
 0x135   :  { %2485 = vmatprep.subr.bf16.mxu0 %v3864_v0  ;;  %2571 = vmatprep.subr.bf16.mxu1 %v3867_v1  ;;  %v3903_v0 = vld [vmem:[#allocation4 + $0x26c] ss:$16 sps:$4 sm:$0xff]   ;;  %v3898_v1 = vld [vmem:[#allocation4 + $0x260] ss:$16 sps:$4 sm:$0xff]  }
 0x138   :  { %2486 = vmatpush1.bf16.msra.mxu0 %v3862_v2  ;;  %2572 = vmatpush1.bf16.msra.mxu1 %v3865_v3  ;;  %v3901_v2 = vld [vmem:[#allocation4 + $0x268] ss:$16 sps:$4 sm:$0xff]   ;;  %v3906_v3 = vld [vmem:[#allocation4 + $0x284] ss:$16 sps:$4 sm:$0xff]  }
 0x139   :  { %2487 = vmatprep.subr.bf16.mxu0 %v3870_v4  ;;  %2573 = vmatprep.subr.bf16.mxu1 %v3873_v5  ;;  %v3909_v4 = vld [vmem:[#allocation4 + $0x28c] ss:$16 sps:$4 sm:$0xff]   ;;  %v3904_v5 = vld [vmem:[#allocation4 + $0x280] ss:$16 sps:$4 sm:$0xff]  }
 0x13c   :  { %2488 = vmatpush1.bf16.msra.mxu0 %v3868_v6  ;;  %2574 = vmatpush1.bf16.msra.mxu1 %v3871_v7  ;;  %v3907_v6 = vld [vmem:[#allocation4 + $0x288] ss:$16 sps:$4 sm:$0xff]   ;;  %v3912_v7 = vld [vmem:[#allocation4 + $0x2a4] ss:$16 sps:$4 sm:$0xff]  }
 0x13d   :  { %2489 = vmatprep.subr.bf16.mxu0 %v3876_v8  ;;  %2575 = vmatprep.subr.bf16.mxu1 %v3879_v9  ;;  %v3915_v8 = vld [vmem:[#allocation4 + $0x2ac] ss:$16 sps:$4 sm:$0xff]   ;;  %v3910_v9 = vld [vmem:[#allocation4 + $0x2a0] ss:$16 sps:$4 sm:$0xff]  }
 0x140   :  { %2490 = vmatpush1.bf16.msra.mxu0 %v3874_v10  ;;  %2576 = vmatpush1.bf16.msra.mxu1 %v3877_v11  ;;  %v3913_v10 = vld [vmem:[#allocation4 + $0x2a8] ss:$16 sps:$4 sm:$0xff]   ;;  %v3918_v11 = vld [vmem:[#allocation4 + $0x2c4] ss:$16 sps:$4 sm:$0xff]  }
 0x141   :  { %2502 = vmatprep.subr.bf16.mxu0 %v3882_v12  ;;  %2588 = vmatprep.subr.bf16.mxu1 %v3885_v13  ;;  %v3921_v12 = vld [vmem:[#allocation4 + $0x2cc] ss:$16 sps:$4 sm:$0xff]   ;;  %v3916_v13 = vld [vmem:[#allocation4 + $0x2c0] ss:$16 sps:$4 sm:$0xff]  }
 0x1d6   :  { %v1476_v25 = vpop.f32.mrb[0].mxu0  ;;  %v1648_v26 = vpop.f32.mrb[0].mxu1 }
 0x1d7   :  { %v3424_v27 = vadd.f32 %v1476_v25, %v277_v21  ;;  %v3428_v28 = vadd.f32 %v1648_v26, %v285_v22  ;;  %v1478_v29 = vpop.f32.mrb[1].mxu0  ;;  %v1650_v30 = vpop.f32.mrb[1].mxu1  ;;  %v3933_v25 = vld [vmem:[#allocation4 + $0x30c] ss:$16 sps:$4 sm:$0xff]   ;;  %v3928_v26 = vld [vmem:[#allocation4 + $0x300] ss:$16 sps:$4 sm:$0xff]  }
 0x1d8   :  { %v3425_v31 = vadd.f32 %v1478_v29, %v281_v23  ;;  %v3429_v32 = vadd.f32 %v1650_v30, %v289_v24  ;;  %v1480_v33 = vpop.f32.mrb[2].mxu0  ;;  %v1652_v34 = vpop.f32.mrb[2].mxu1  ;;  %v3939_v29 = vld [vmem:[#allocation4 + $0x32c] ss:$16 sps:$4 sm:$0xff]   ;;  %v3934_v30 = vld [vmem:[#allocation4 + $0x320] ss:$16 sps:$4 sm:$0xff]  }
 0x1d9   :  { %v3426_v35 = vadd.f32 %v1480_v33, %v277_v21  ;;  %v3430_v36 = vadd.f32 %v1652_v34, %v285_v22  ;;  %v1482_v37 = vpop.f32.mrb[3].mxu0  ;;  %v1654_v38 = vpop.f32.mrb[3].mxu1  ;;  %v1657_v41 = vmax.f32 %v3424_v27, 0.0  ;;  %v1659_v42 = vmax.f32 %v3428_v28, 0.0  ;;  %v3927_v21 = vld [vmem:[#allocation4 + $0x2ec] ss:$16 sps:$4 sm:$0xff]  }
 0x1da   :  { %v3427_v39 = vadd.f32 %v1482_v37, %v281_v23  ;;  %v3431_v40 = vadd.f32 %v1654_v38, %v289_v24  ;;  %v1658_v45 = vmax.f32 %v3425_v31, 0.0  ;;  %v1660_v46 = vmax.f32 %v3429_v32, 0.0  ;;  %v3922_v22 = vld [vmem:[#allocation4 + $0x2e0] ss:$16 sps:$4 sm:$0xff]   ;;  %v3925_v23 = vld [vmem:[#allocation4 + $0x2e8] ss:$16 sps:$4 sm:$0xff]  }
 0x1db   :  { %v1661_v43 = vmax.f32 %v3426_v35, 0.0  ;;  %v1663_v44 = vmax.f32 %v3430_v36, 0.0  ;;  %v3930_v24 = vld [vmem:[#allocation4 + $0x304] ss:$16 sps:$4 sm:$0xff]   ;;  %v3931_v27 = vld [vmem:[#allocation4 + $0x308] ss:$16 sps:$4 sm:$0xff]  }
 0x1dc   :  { %v1662_v47 = vmax.f32 %v3427_v39, 0.0  ;;  %v1664_v48 = vmax.f32 %v3431_v40, 0.0  ;;  %v3936_v28 = vld [vmem:[#allocation4 + $0x324] ss:$16 sps:$4 sm:$0xff]   ;;  %v3937_v31 = vld [vmem:[#allocation4 + $0x328] ss:$16 sps:$4 sm:$0xff]  }
 0x1dd   :  { %v1665_v49 = vpack.c.bf16 %v1661_v43, %v1657_v41  ;;  %v4215_v50 = vpack.c.bf16 %v1663_v44, %v1659_v42  ;;  %v3942_v32 = vld [vmem:[#allocation4 + $0x344] ss:$16 sps:$4 sm:$0xff]   ;;  %v3945_v33 = vld [vmem:[#allocation4 + $0x34c] ss:$16 sps:$4 sm:$0xff]   ;;  %v3940_v34 = vld [vmem:[#allocation4 + $0x340] ss:$16 sps:$4 sm:$0xff]  }
 0x1de   :  { %v1666_v51 = vpack.c.bf16 %v1662_v47, %v1658_v45  ;;  %v1668_v52 = vpack.c.bf16 %v1664_v48, %v1660_v46  ;;  %v3943_v35 = vld [vmem:[#allocation4 + $0x348] ss:$16 sps:$4 sm:$0xff]   ;;  %v3948_v36 = vld [vmem:[#allocation4 + $0x364] ss:$16 sps:$4 sm:$0xff]   ;;  %v3951_v37 = vld [vmem:[#allocation4 + $0x36c] ss:$16 sps:$4 sm:$0xff]  }
 0x1df   :  { %v3946_v38 = vld [vmem:[#allocation4 + $0x360] ss:$16 sps:$4 sm:$0xff]   ;;  %v3949_v39 = vld [vmem:[#allocation4 + $0x368] ss:$16 sps:$4 sm:$0xff]   ;;  %v3954_v40 = vld [vmem:[#allocation4 + $0x384] ss:$16 sps:$4 sm:$0xff]  }
 0x1e0   :  { %2491 = vmatprep.mubr.bf16.mxu0 %v1666_v51  ;;  %2577 = vmatprep.mubr.bf16.mxu1 %v1666_v51  ;;  %v3957_v41 = vld [vmem:[#allocation4 + $0x38c] ss:$16 sps:$4 sm:$0xff]   ;;  %v3952_v42 = vld [vmem:[#allocation4 + $0x380] ss:$16 sps:$4 sm:$0xff]   ;;  %v3955_v43 = vld [vmem:[#allocation4 + $0x388] ss:$16 sps:$4 sm:$0xff]  }
 0x1e1   :  { %2492 = vmatmul.mubr.bf16.vlgmr.msra.gmra.mrb[4].mxu0 %v1665_v49  ;;  %2578 = vmatmul.mubr.bf16.vlgmr.msra.gmra.mrb[4].mxu1 %v1665_v49  ;;  %v3960_v44 = vld [vmem:[#allocation4 + $0x3a4] ss:$16 sps:$4 sm:$0xff]   ;;  %v3963_v45 = vld [vmem:[#allocation4 + $0x3ac] ss:$16 sps:$4 sm:$0xff]   ;;  %v3958_v46 = vld [vmem:[#allocation4 + $0x3a0] ss:$16 sps:$4 sm:$0xff]  }
 0x1e2   :  { %2503 = vmatpush1.bf16.msra.mxu0 %v3880_v53  ;;  %2589 = vmatpush1.bf16.msra.mxu1 %v3883_v54  ;;  %v3961_v47 = vld [vmem:[#allocation4 + $0x3a8] ss:$16 sps:$4 sm:$0xff]   ;;  %v3966_v48 = vld [vmem:[#allocation4 + $0x3c4] ss:$16 sps:$4 sm:$0xff]   ;;  %v3969_v49 = vld [vmem:[#allocation4 + $0x3cc] ss:$16 sps:$4 sm:$0xff]  }
 0x1e3   :  { %2534 = vmatprep.mubr.bf16.mxu0 %v1668_v52  ;;  %2620 = vmatprep.mubr.bf16.mxu1 %v1668_v52  ;;  %v3964_v51 = vld [vmem:[#allocation4 + $0x3c0] ss:$16 sps:$4 sm:$0xff]   ;;  %v3967_v52 = vld [vmem:[#allocation4 + $0x3c8] ss:$16 sps:$4 sm:$0xff]   ;;  %v3972_v53 = vld [vmem:[#allocation4 + $0x3e4] ss:$16 sps:$4 sm:$0xff]  }
 0x1e4   :  { %2504 = vmatprep.subr.bf16.mxu0 %v3888_v55  ;;  %2590 = vmatprep.subr.bf16.mxu1 %v3891_v56  ;;  %v3975_v54 = vld [vmem:[#allocation4 + $0x3ec] ss:$16 sps:$4 sm:$0xff]   ;;  %v3970_v55 = vld [vmem:[#allocation4 + $0x3e0] ss:$16 sps:$4 sm:$0xff]   ;;  %v3973_v56 = vld [vmem:[#allocation4 + $0x3e8] ss:$16 sps:$4 sm:$0xff]  }
 0x1e6   :  { %2505 = vmatpush1.bf16.msra.mxu0 %v3886_v57  ;;  %2591 = vmatpush1.bf16.msra.mxu1 %v3889_v58  ;;  %v3976_v57 = vld [vmem:[#allocation6 + $0x40] sm:$0xff]  }
 0x1e7   :  { %2506 = vmatprep.subr.bf16.mxu0 %v3894_v59  ;;  %2592 = vmatprep.subr.bf16.mxu1 %v3897_v60  ;;  %v3977_v58 = vld [vmem:[#allocation6 + $0xc0] sm:$0xff]  }
 0x1e8   :  { %v3978_v59 = vld [vmem:[#allocation6] sm:$0xff]  }
 0x1e9   :  { %v3979_v60 = vld [vmem:[#allocation6 + $0x80] sm:$0xff]  }
 0x1ea   :  { %2507 = vmatpush1.bf16.msra.mxu0 %v3892_v61  ;;  %2593 = vmatpush1.bf16.msra.mxu1 %v3895_v62  ;;  %v3980_v61 = vld [vmem:[#allocation6 + $0x48] sm:$0xff]  }
 0x1eb   :  { %2508 = vmatprep.subr.bf16.mxu0 %v3900_v63  ;;  %2594 = vmatprep.subr.bf16.mxu1 %v3903_v0  ;;  %v3981_v62 = vld [vmem:[#allocation6 + $0xc8] sm:$0xff]  }
 0x1ec   :  { %v3982_v63 = vld [vmem:[#allocation6 + $0x8] sm:$0xff]  }
 0x1ed   :  { %v3983_v0 = vld [vmem:[#allocation6 + $0x88] sm:$0xff]  }
 0x1ee   :  { %2509 = vmatpush1.bf16.msra.mxu0 %v3898_v1  ;;  %2595 = vmatpush1.bf16.msra.mxu1 %v3901_v2  ;;  %v3984_v1 = vld [vmem:[#allocation6 + $0x50] sm:$0xff]  }
 0x1ef   :  { %2510 = vmatprep.subr.bf16.mxu0 %v3906_v3  ;;  %2596 = vmatprep.subr.bf16.mxu1 %v3909_v4  ;;  %v3985_v2 = vld [vmem:[#allocation6 + $0xd0] sm:$0xff]  }
 0x1f0   :  { %v3986_v3 = vld [vmem:[#allocation6 + $0x10] sm:$0xff]  }
 0x1f1   :  { %v3987_v4 = vld [vmem:[#allocation6 + $0x90] sm:$0xff]  }
 0x1f2   :  { %2511 = vmatpush1.bf16.msra.mxu0 %v3904_v5  ;;  %2597 = vmatpush1.bf16.msra.mxu1 %v3907_v6  ;;  %v3988_v5 = vld [vmem:[#allocation6 + $0x58] sm:$0xff]  }
 0x1f3   :  { %2512 = vmatprep.subr.bf16.mxu0 %v3912_v7  ;;  %2598 = vmatprep.subr.bf16.mxu1 %v3915_v8  ;;  %v3989_v6 = vld [vmem:[#allocation6 + $0xd8] sm:$0xff]   ;;  %v3992_v8 = vld [vmem:[#allocation6 + $0x60] sm:$0xff]  }
 0x1f4   :  { %v3990_v7 = vld [vmem:[#allocation6 + $0x18] sm:$0xff]  }
 0x1f6   :  { %2513 = vmatpush1.bf16.msra.mxu0 %v3910_v9  ;;  %2599 = vmatpush1.bf16.msra.mxu1 %v3913_v10  ;;  %v3993_v9 = vld [vmem:[#allocation6 + $0xe0] sm:$0xff]  }
 0x1f7   :  { %2514 = vmatprep.subr.bf16.mxu0 %v3918_v11  ;;  %2600 = vmatprep.subr.bf16.mxu1 %v3921_v12  ;;  %v3994_v10 = vld [vmem:[#allocation6 + $0x20] sm:$0xff]   ;;  %v3996_v12 = vld [vmem:[#allocation6 + $0x68] sm:$0xff]  }
 0x1f8   :  { %v3995_v11 = vld [vmem:[#allocation6 + $0xa0] sm:$0xff]  }
 0x1fa   :  { %2515 = vmatpush1.bf16.msra.mxu0 %v3916_v13  ;;  %2601 = vmatpush1.bf16.msra.mxu1 %v3919_v14  ;;  %v3997_v13 = vld [vmem:[#allocation6 + $0xe8] sm:$0xff]  }
 0x1fb   :  { %2516 = vmatprep.subr.bf16.mxu0 %v3924_v18  ;;  %2602 = vmatprep.subr.bf16.mxu1 %v3927_v21  ;;  %v3998_v14 = vld [vmem:[#allocation6 + $0x28] sm:$0xff]   ;;  %v4000_v21 = vld [vmem:[#allocation6 + $0x70] sm:$0xff]  }
 0x1fc   :  { %v3999_v18 = vld [vmem:[#allocation6 + $0xa8] sm:$0xff]  }
 0x1fe   :  { %2517 = vmatpush1.bf16.msra.mxu0 %v3922_v22  ;;  %2603 = vmatpush1.bf16.msra.mxu1 %v3925_v23  ;;  %v4001_v22 = vld [vmem:[#allocation6 + $0xf0] sm:$0xff]  }
 0x1ff   :  { %2518 = vmatprep.subr.bf16.mxu0 %v3930_v24  ;;  %2604 = vmatprep.subr.bf16.mxu1 %v3933_v25  ;;  %v4002_v23 = vld [vmem:[#allocation6 + $0x30] sm:$0xff]   ;;  %v4004_v25 = vld [vmem:[#allocation6 + $0x78] sm:$0xff]  }
 0x200   :  { %v4003_v24 = vld [vmem:[#allocation6 + $0xb0] sm:$0xff]  }
 0x202   :  { %2519 = vmatpush1.bf16.msra.mxu0 %v3928_v26  ;;  %2605 = vmatpush1.bf16.msra.mxu1 %v3931_v27  ;;  %v4005_v26 = vld [vmem:[#allocation6 + $0xf8] sm:$0xff]  }
 0x203   :  { %2520 = vmatprep.subr.bf16.mxu0 %v3936_v28  ;;  %2606 = vmatprep.subr.bf16.mxu1 %v3939_v29  ;;  %v4006_v27 = vld [vmem:[#allocation6 + $0x38] sm:$0xff]   ;;  %v1797_v29 = vld [vmem:[%s4243_s4] sm:$0xf] }
 0x204   :  { %v4007_v28 = vld [vmem:[#allocation6 + $0xb8] sm:$0xff]  }
 0x206   :  { %2521 = vmatpush1.bf16.msra.mxu0 %v3934_v30  ;;  %2607 = vmatpush1.bf16.msra.mxu1 %v3937_v31  ;;  %v1802_v30 = vrot.slane %v1797_v29, %v276_v16  ;;  %v1810_v31 = vrot.slane %v1797_v29, %v284_v17 }
 0x207   :  { %2522 = vmatprep.subr.bf16.mxu0 %v3942_v32  ;;  %2608 = vmatprep.subr.bf16.mxu1 %v3945_v33  ;;  %v1806_v32 = vrot.slane %v1797_v29, %v280_v19  ;;  %v1814_v33 = vrot.slane %v1797_v29, %v288_v20 }
 0x20a   :  { %2523 = vmatpush1.bf16.msra.mxu0 %v3940_v34  ;;  %2609 = vmatpush1.bf16.msra.mxu1 %v3943_v35 }
 0x20b   :  { %2524 = vmatprep.subr.bf16.mxu0 %v3948_v36  ;;  %2610 = vmatprep.subr.bf16.mxu1 %v3951_v37 }
 0x20e   :  { %2525 = vmatpush1.bf16.msra.mxu0 %v3946_v38  ;;  %2611 = vmatpush1.bf16.msra.mxu1 %v3949_v39 }
 0x20f   :  { %2526 = vmatprep.subr.bf16.mxu0 %v3954_v40  ;;  %2612 = vmatprep.subr.bf16.mxu1 %v3957_v41 }
 0x212   :  { %2527 = vmatpush1.bf16.msra.mxu0 %v3952_v42  ;;  %2613 = vmatpush1.bf16.msra.mxu1 %v3955_v43 }
 0x213   :  { %2528 = vmatprep.subr.bf16.mxu0 %v3960_v44  ;;  %2614 = vmatprep.subr.bf16.mxu1 %v3963_v45 }
 0x216   :  { %2529 = vmatpush1.bf16.msra.mxu0 %v3958_v46  ;;  %2615 = vmatpush1.bf16.msra.mxu1 %v3961_v47 }
 0x217   :  { %2530 = vmatprep.subr.bf16.mxu0 %v3966_v48  ;;  %2616 = vmatprep.subr.bf16.mxu1 %v3969_v49 }
 0x21a   :  { %2531 = vmatpush1.bf16.msra.mxu0 %v3964_v51  ;;  %2617 = vmatpush1.bf16.msra.mxu1 %v3967_v52 }
 0x21b   :  { %2532 = vmatprep.subr.bf16.mxu0 %v3972_v53  ;;  %2618 = vmatprep.subr.bf16.mxu1 %v3975_v54 }
 0x21e   :  { %2533 = vmatpush1.bf16.msra.mxu0 %v3970_v55  ;;  %2619 = vmatpush1.bf16.msra.mxu1 %v3973_v56 }
 0x21f   :  { %3380 = vmatprep.subr.bf16.mxu0 %v3976_v57  ;;  %3402 = vmatprep.subr.bf16.mxu1 %v3977_v58 }
 0x221   :  { %2535 = vmatmul.mubr.bf16.vlgmr.msra.gmra.mrb[4].mxu0 %v4215_v50  ;;  %2621 = vmatmul.mubr.bf16.vlgmr.msra.gmra.mrb[4].mxu1 %v4215_v50  ;;  %v3991_v50 = vld [vmem:[#allocation6 + $0x98] sm:$0xff]  }
 0x222   :  { %3381 = vmatpush3.bf16.msra.mxu0 %v3978_v59  ;;  %3403 = vmatpush3.bf16.msra.mxu1 %v3979_v60  ;;  %v3347_v60 = vld [vmem:[%s4245_s6] ss:$0 sm:$0xff] }
 0x223   :  { %3382 = vmatprep.subr.bf16.mxu0 %v3980_v61  ;;  %3404 = vmatprep.subr.bf16.mxu1 %v3981_v62 }
 0x226   :  { %3383 = vmatpush3.bf16.msra.mxu0 %v3982_v63  ;;  %3405 = vmatpush3.bf16.msra.mxu1 %v3983_v0 }
 0x227   :  { %3384 = vmatprep.subr.bf16.mxu0 %v3984_v1  ;;  %3406 = vmatprep.subr.bf16.mxu1 %v3985_v2 }
 0x22a   :  { %3385 = vmatpush3.bf16.msra.mxu0 %v3986_v3  ;;  %3407 = vmatpush3.bf16.msra.mxu1 %v3987_v4 }
 0x22b   :  { %3386 = vmatprep.subr.bf16.mxu0 %v3988_v5  ;;  %3408 = vmatprep.subr.bf16.mxu1 %v3989_v6 }
 0x22e   :  { %3387 = vmatpush3.bf16.msra.mxu0 %v3990_v7  ;;  %3409 = vmatpush3.bf16.msra.mxu1 %v3991_v50 }
 0x22f   :  { %3388 = vmatprep.subr.bf16.mxu0 %v3992_v8  ;;  %3410 = vmatprep.subr.bf16.mxu1 %v3993_v9 }
 0x232   :  { %3389 = vmatpush3.bf16.msra.mxu0 %v3994_v10  ;;  %3411 = vmatpush3.bf16.msra.mxu1 %v3995_v11 }
 0x233   :  { %3390 = vmatprep.subr.bf16.mxu0 %v3996_v12  ;;  %3412 = vmatprep.subr.bf16.mxu1 %v3997_v13 }
 0x236   :  { %3391 = vmatpush3.bf16.msra.mxu0 %v3998_v14  ;;  %3413 = vmatpush3.bf16.msra.mxu1 %v3999_v18 }
 0x237   :  { %3392 = vmatprep.subr.bf16.mxu0 %v4000_v21  ;;  %3414 = vmatprep.subr.bf16.mxu1 %v4001_v22 }
 0x23a   :  { %3393 = vmatpush3.bf16.msra.mxu0 %v4002_v23  ;;  %3415 = vmatpush3.bf16.msra.mxu1 %v4003_v24 }
 0x23b   :  { %3394 = vmatprep.subr.bf16.mxu0 %v4004_v25  ;;  %3416 = vmatprep.subr.bf16.mxu1 %v4005_v26 }
 0x23e   :  { %3395 = vmatpush3.bf16.msra.mxu0 %v4006_v27  ;;  %3417 = vmatpush3.bf16.msra.mxu1 %v4007_v28 }
 0x2f4   :  { %v2536_v34 = vpop.f32.mrb[4].mxu0  ;;  %v2622_v35 = vpop.f32.mrb[4].mxu1 }
 0x2f5   :  { %v3432_v36 = vadd.f32 %v2536_v34, %v1802_v30  ;;  %v3436_v37 = vadd.f32 %v2622_v35, %v1810_v31  ;;  %v2538_v38 = vpop.f32.mrb[5].mxu0  ;;  %v2624_v39 = vpop.f32.mrb[5].mxu1 }
 0x2f6   :  { %v3433_v40 = vadd.f32 %v2538_v38, %v1806_v32  ;;  %v3437_v41 = vadd.f32 %v2624_v39, %v1814_v33  ;;  %v2540_v42 = vpop.f32.mrb[6].mxu0  ;;  %v2626_v43 = vpop.f32.mrb[6].mxu1 }
 0x2f7   :  { %v3434_v16 = vadd.f32 %v2540_v42, %v1802_v30  ;;  %v3438_v44 = vadd.f32 %v2626_v43, %v1810_v31  ;;  %v2542_v45 = vpop.f32.mrb[7].mxu0  ;;  %v2628_v17 = vpop.f32.mrb[7].mxu1  ;;  %v2631_v19 = vmax.f32 %v3432_v36, 0.0  ;;  %v2633_v48 = vmax.f32 %v3436_v37, 0.0 }
 0x2f8   :  { %v3435_v46 = vadd.f32 %v2542_v45, %v1806_v32  ;;  %v3439_v47 = vadd.f32 %v2628_v17, %v1814_v33  ;;  %v2632_v49 = vmax.f32 %v3433_v40, 0.0  ;;  %v2634_v51 = vmax.f32 %v3437_v41, 0.0 }
 0x2f9   :  { %v2635_v15 = vmax.f32 %v3434_v16, 0.0  ;;  %v2637_v20 = vmax.f32 %v3438_v44, 0.0 }
 0x2fa   :  { %v2636_v52 = vmax.f32 %v3435_v46, 0.0  ;;  %v2638_v53 = vmax.f32 %v3439_v47, 0.0 }
 0x2fb   :  { %v2639_v54 = vpack.c.bf16 %v2635_v15, %v2631_v19  ;;  %v2641_v55 = vpack.c.bf16 %v2637_v20, %v2633_v48 }
 0x2fc   :  { %v2640_v56 = vpack.c.bf16 %v2636_v52, %v2632_v49  ;;  %v2642_v57 = vpack.c.bf16 %v2638_v53, %v2634_v51 }
 0x2fe   :  { %2938 = vmatprep.mubr.bf16.mxu0 %v2640_v56  ;;  %2979 = vmatprep.mubr.bf16.mxu1 %v2642_v57 }
 0x2ff   :  { %2939 = vmatmul.mubr.bf16.vlgmr.msra.gmra.mrb[8].mxu0 %v2639_v54  ;;  %2980 = vmatmul.mubr.bf16.vlgmr.msra.gmra.mrb[8].mxu1 %v2641_v55 }
 0x3d2   :  { %v3396_v58 = vpop.f32.mrb[8].mxu0  ;;  %v3418_v59 = vpop.f32.mrb[8].mxu1 }
 0x3d3   :  { %v3397_v61 = vpop.f32.mrb[9].mxu0  ;;  %v3419_v62 = vpop.f32.mrb[9].mxu1 }
 0x3d4   :  { %v3398_v63 = vadd.f32 %v3397_v61, %v3396_v58  ;;  %v3420_v0 = vadd.f32 %v3419_v62, %v3418_v59  ;;  %v3399_v1 = vpop.f32.mrb[10].mxu0  ;;  %v3421_v2 = vpop.f32.mrb[10].mxu1 }
 0x3d5   :  { %v3400_v3 = vpop.f32.mrb[11].mxu0  ;;  %v3422_v4 = vpop.f32.mrb[11].mxu1 }
 0x3d6   :  { %v2941_v5 = vadd.f32 %v3398_v63, %v3347_v60  ;;  %v3401_v6 = vadd.f32 %v3400_v3, %v3399_v1  ;;  %v3423_v7 = vadd.f32 %v3422_v4, %v3421_v2 }
 0x3d8   :  { %v2944_v50 = vadd.f32 %v3401_v6, %v3347_v60  ;;  %v2982_v8 = vadd.f32 %v3420_v0, %v2941_v5 }
 0x3da   :  { %2988 = vmax.xlane.f32.xlu0 %v2982_v8  ;;  %v2985_v9 = vadd.f32 %v3423_v7, %v2944_v50 }
 0x3de   :  { %2990 = vmax.xlane.f32.xlu0 %v2985_v9 }
 0x467   :  { %v2989_v10 = vpop.xlane.xlu0 %2988 }
 0x468   :  { %v2992_v11 = vsub.f32 %v2982_v8, %v2989_v10 }
 0x46a   :  { %v2994_v12 = vmul.f32 1.442695, %v2992_v11 }
 0x46b   :  { %v2991_v13 = vpop.xlane.xlu0 %2990 }
 0x46c   :  { %4008 = vpow2.f32 %v2994_v12  ;;  %v2993_v14 = vsub.f32 %v2985_v9, %v2991_v13 }
 0x46e   :  { %v2996_v18 = vmul.f32 1.442695, %v2993_v14 }
 0x470   :  { %4010 = vpow2.f32 %v2996_v18 }
 0x476   :  { %v4009_v21 = vpop.eup %4008 }
 0x477   :  { %2998 = vadd.xlane.f32.xlu1 %v4009_v21 }
 0x47a   :  { %v4011_v22 = vpop.eup %4010 }
 0x47b   :  { %3000 = vadd.xlane.f32.xlu1 %v4011_v22 }
 0x504   :  { %v2999_v23 = vpop.xlane.xlu1 %2998 }
 0x505   :  { %4012 = vrcp.f32 %v2999_v23 }
 0x508   :  { %v3001_v24 = vpop.xlane.xlu1 %3000 }
 0x509   :  { %4014 = vrcp.f32 %v3001_v24 }
 0x50f   :  { %v4013_v25 = vpop.eup %4012 }
 0x510   :  { %v3004_v26 = vmul.f32 %v4013_v25, %v4009_v21 }
 0x512   :  { %3006 = vst [vmem:[%s4246_s7] sm:$0xff] %v3004_v26 }
 0x513   :  { %v4015_v27 = vpop.eup %4014 }
 0x514   :  { %v3005_v28 = vmul.f32 %v4015_v27, %v4011_v22 }
 0x516   :  { %3007 = vst [vmem:[%s4246_s7 + $0x8] sm:$0xff] %v3005_v28 }
 0x517   :  { %3012 = vsyncpa [#allocation3], 1 }
 0x518   :  { %3013 = vsyncpa [#allocation5], 1 }

</bundles_post_ra>
